<compile_context>
chip_gen: v5e
topology: v5e:2x2
jax: 0.10.0
libtpu: 0.0.40
codegen_flags: <defaults>
</compile_context>

<pallas_src>
import jax
import jax.numpy as jnp
from jax import lax
from jax.experimental import pallas as pl
from jax.experimental.pallas import tpu as pltpu

HIDDEN = 128


def _make_gru_kernel(T, b_tile, num_chains, matmul_dtype, unroll):
    """Fused GRU recurrence (PyTorch gate order r, z, n) + Linear(128->1)."""
    H = HIDDEN
    b_half = b_tile // num_chains

    def kernel(x_ref, w_ih_ref, w_hh_ref, b_gi_ref, b_hn_ref,
               w_fc_ref, b_fc_ref, out_ref, gi_ref):
        # x_ref   : (T, b_tile)  time-major input (feature dim 1 squeezed)
        # w_ih_ref: (1, 3H)  w_hh_ref: (H, 3H)
        # b_gi_ref: (1, 3H)  = b_ih + [b_hh_r, b_hh_z, 0]   (folded biases)
        # b_hn_ref: (1, H)   = b_hh_n (must stay inside the r* term)
        # w_fc_ref: (1, H)   b_fc_ref: (1, 1)
        # out_ref : (b_tile, 1)
        # gi_ref  : (T, b_tile, 3H) VMEM scratch (hoisted input projection)
        w_ih = w_ih_ref[...]
        b_gi = b_gi_ref[...]
        b_hn = b_hn_ref[...]
        # bf16 MXU operands by default: the per-step (b_half,128)@(128,384)
        # matmul sits on the serial critical path; f32 operands would force a
        # multi-pass MXU decomposition.  h and the gate math stay f32.
        w_hh = w_hh_ref[...].astype(matmul_dtype)

        # ---- Hoisted input projection (one vectorized VPU pass) ------------
        # input_size == 1, so x @ W_ih^T is a broadcasted FMA; doing it for the
        # whole sequence up front removes an FMA + bias add from the serial
        # per-timestep path.  Stored in gi_ref.dtype (bf16 default) to halve
        # VMEM footprint and per-step load traffic.
        x = x_ref[...]                                        # (T, b_tile)
        gi_ref[...] = (x[:, :, None] * w_ih[None, :, :]
                       + b_gi[None, :, :]).astype(gi_ref.dtype)

        def step(t, hs):
            gi_t = gi_ref[t].astype(jnp.float32)              # (b_tile, 3H)
            new_hs = []
            # num_chains independent batch sub-chains: chain B's matmul can
            # issue while chain A's gates sit in the EUP FIFO (latency hiding;
            # the LLO scheduler interleaves the independent dataflow).
            for c in range(num_chains):
                h = hs[c]                                     # (b_half, H) f32
                gi = gi_t[c * b_half:(c + 1) * b_half, :]
                gh = jnp.dot(h.astype(matmul_dtype), w_hh,
                             preferred_element_type=jnp.float32)
                r = jax.nn.sigmoid(gi[:, 0:H] + gh[:, 0:H])
                z = jax.nn.sigmoid(gi[:, H:2 * H] + gh[:, H:2 * H])
                # b_hh_n applied to gh_n *before* the r* multiply — exact
                # torch.nn.GRU semantics (only b_ih+b_hh_{r,z} were folded).
                n = jnp.tanh(gi[:, 2 * H:3 * H]
                             + r * (gh[:, 2 * H:3 * H] + b_hn))
                new_hs.append((1.0 - z) * n + z * h)          # h stays f32
            return tuple(new_hs)

        h0 = tuple(jnp.zeros((b_half, H), jnp.float32)
                   for _ in range(num_chains))
        hs = lax.fori_loop(0, T, step, h0, unroll=unroll)
        h_last = hs[0] if num_chains == 1 else jnp.concatenate(list(hs), axis=0)

        # N=1 epilogue on VPU + lane reduction instead of a wasted MXU pass.
        out = (jnp.sum(h_last * w_fc_ref[...], axis=-1, keepdims=True)
               + b_fc_ref[...])
        out_ref[...] = out.astype(out_ref.dtype)

    return kernel


def _pick_batch_tile(B):
    # Batch sits on the lane dim of the (T, B) input block, so keep b_tile a
    # multiple of 128 (or the full B).  Prefer >= 2 grid blocks so v7x's two
    # TensorCores both get work; 256 also fills v6e's 2x256 MXU M dim.
    for tile in (256, 128):
        if B % tile == 0 and B // tile >= 2:
            return tile
    # TODO(synk): for B == 128 on v7x a batch-on-sublane layout would allow
    # b_tile=64 (2 blocks); not worth the extra transpose at these shapes.
    return B


def lstm_forward(x, params, *, matmul_dtype=jnp.bfloat16, gi_dtype=None):
    """x: (B, T, 1) float32 -> (B, 1) float32, matching the module's forward.

    Defaults to bf16 MXU operands + bf16 gi scratch (v6e/v7x sweet spot); pass
    matmul_dtype=jnp.float32 for an exact f32 path (and consider it on v5e if
    the bf16 convert passes show up on the VPU hot path).
    """
    B, T, F = x.shape
    assert F == 1
    H = HIDDEN
    if gi_dtype is None:
        gi_dtype = matmul_dtype

    x_tb = jnp.transpose(x.reshape(B, T)).astype(jnp.float32)      # (T, B)

    # Normalize parameter shapes (accepts make_params output directly).
    w_ih = params["w_ih_t"].reshape(1, 3 * H)
    w_hh = params["w_hh_t"].reshape(H, 3 * H)
    b_ih = params["b_ih"].reshape(1, 3 * H)
    b_hh = params["b_hh"].reshape(1, 3 * H)
    w_fc = params["w_fc_t"].reshape(1, H)
    b_fc = params["b_fc"].reshape(1, 1)
    # Fold b_ih (+ b_hh for the r/z gates) into the hoisted projection; b_hh_n
    # stays separate and is applied inside the r* term in the kernel.
    b_gi = b_ih + jnp.concatenate(
        [b_hh[:, :2 * H], jnp.zeros((1, H), jnp.float32)], axis=-1)
    b_hn = b_hh[:, 2 * H:]

    b_tile = _pick_batch_tile(B)
    grid = (B // b_tile,)
    # Two interleaved sub-chains whenever the sublane split is clean.
    num_chains = 2 if b_tile % 16 == 0 else 1
    # Moderate unroll with 2 chains keeps vreg pressure (2 live h tiles +
    # transient gate vregs) under control while still exposing cross-step
    # MXU/EUP/VPU overlap to the LLO scheduler.
    unroll = True if T <= 16 else (4 if num_chains == 2 else 8)
    kernel = _make_gru_kernel(T, b_tile, num_chains, matmul_dtype, unroll)
    full = lambda b: (0, 0)

    # Explicit scoped-VMEM budget: gi scratch + double-buffered x block +
    # weights + headroom (avoids silent rejection at the default limit).
    gi_bytes = T * b_tile * 3 * H * jnp.dtype(gi_dtype).itemsize
    x_bytes = 2 * T * b_tile * 4
    w_bytes = 2 * 4 * (H * 3 * H + 2 * 3 * H + 2 * H + 1)
    vmem_limit = int(min(max(gi_bytes + x_bytes + w_bytes + (4 << 20),
                             32 << 20), 120 << 20))

    # TODO(synk): for very long sequences, additionally grid over the time axis
    # ("arbitrary") carrying h in scratch with pl.when init/finalize and chunk
    # the gi precompute (e.g. 32-64 steps) to bound VMEM — matters first on
    # v7x's 64 MiB VMEM; unnecessary at these shapes.
    return pl.pallas_call(
        kernel,
        out_shape=jax.ShapeDtypeStruct((B, 1), jnp.float32),
        grid=grid,
        in_specs=[
            pl.BlockSpec((T, b_tile), lambda b: (0, b)),    # x, time-major
            pl.BlockSpec((1, 3 * H), full),                 # w_ih^T
            pl.BlockSpec((H, 3 * H), full),                 # w_hh^T
            pl.BlockSpec((1, 3 * H), full),                 # folded b_gi
            pl.BlockSpec((1, H), full),                     # b_hh_n
            pl.BlockSpec((1, H), full),                     # fc1.weight row
            pl.BlockSpec((1, 1), full),                     # fc1.bias
        ],
        out_specs=pl.BlockSpec((b_tile, 1), lambda b: (b, 0)),
        scratch_shapes=[pltpu.VMEM((T, b_tile, 3 * H), gi_dtype)],
        compiler_params=pltpu.CompilerParams(
            # Batch tiles are fully independent -> megacore-shardable on v7x.
            dimension_semantics=("parallel",),
            vmem_limit_bytes=vmem_limit,
        ),
    )(x_tb, w_ih, w_hh, b_gi, b_hn, w_fc, b_fc)


def make_params(key):
    """Deterministic synthetic parameters with PyTorch GRU/Linear shapes."""
    H = HIDDEN
    k = jax.random.split(key, 6)
    scale = 1.0 / jnp.sqrt(H)
    w_ih = jax.random.uniform(k[0], (3 * H, 1), jnp.float32, -scale, scale)
    w_hh = jax.random.uniform(k[1], (3 * H, H), jnp.float32, -scale, scale)
    b_ih = jax.random.uniform(k[2], (3 * H,), jnp.float32, -scale, scale)
    b_hh = jax.random.uniform(k[3], (3 * H,), jnp.float32, -scale, scale)
    w_fc = jax.random.uniform(k[4], (1, H), jnp.float32, -scale, scale)
    b_fc = jax.random.uniform(k[5], (1,), jnp.float32, -scale, scale)
    return {
        "w_ih_t": w_ih.T,                    # (1, 3H)
        "w_hh_t": w_hh.T,                    # (H, 3H)
        "b_ih": b_ih.reshape(1, 3 * H),
        "b_hh": b_hh.reshape(1, 3 * H),
        "w_fc_t": w_fc.reshape(1, H),        # Linear(128->1) weight as a row
        "b_fc": b_fc.reshape(1, 1),
    }


def reference_forward(x, params):
    """Pure-JAX reference reproducing torch.nn.GRU(1->128) + Linear(128->1)."""
    B, T, _ = x.shape
    H = HIDDEN
    w_ih = params["w_ih_t"].reshape(1, 3 * H)
    w_hh = params["w_hh_t"].reshape(H, 3 * H)
    b_ih = params["b_ih"].reshape(1, 3 * H)
    b_hh = params["b_hh"].reshape(1, 3 * H)
    h = jnp.zeros((B, H), jnp.float32)
    for t in range(T):
        gi = x[:, t, :] @ w_ih + b_ih
        gh = h @ w_hh + b_hh
        r = jax.nn.sigmoid(gi[:, 0:H] + gh[:, 0:H])
        z = jax.nn.sigmoid(gi[:, H:2 * H] + gh[:, H:2 * H])
        n = jnp.tanh(gi[:, 2 * H:3 * H] + r * gh[:, 2 * H:3 * H])
        h = (1.0 - z) * n + z * h
    return h @ params["w_fc_t"].reshape(1, H).T + params["b_fc"].reshape(1, 1)


if __name__ == "__main__":
    key = jax.random.PRNGKey(0)
    k_x1, k_x2, k_p = jax.random.split(key, 3)
    params = make_params(k_p)

    # Exercise both the single-chain (B=8) and interleaved 2-chain (B=32)
    # recurrence paths at small shapes.
    for (B, T, k_x) in ((8, 8, k_x1), (32, 8, k_x2)):
        x = jax.random.normal(k_x, (B, T, 1), jnp.float32)
        ref = reference_forward(x, params)

        # f32 MXU path: matches the f32 reference tightly.
        out_f32 = jax.block_until_ready(
            lstm_forward(x, params, matmul_dtype=jnp.float32))
        assert out_f32.shape == (B, 1)
        assert jnp.allclose(out_f32, ref, atol=1e-5, rtol=1e-5), (
            f"f32 mismatch (B={B}): max abs err "
            f"{jnp.max(jnp.abs(out_f32 - ref))}")

        # Default bf16 MXU-operand + bf16 gi path (h kept in f32): small drift,
        # validated with a looser tolerance.
        out_bf16 = jax.block_until_ready(lstm_forward(x, params))
        assert jnp.allclose(out_bf16, ref, atol=5e-2, rtol=5e-2), (
            f"bf16 mismatch (B={B}): max abs err "
            f"{jnp.max(jnp.abs(out_bf16 - ref))}")

    print("KERNEL_OK")
</pallas_src>

<mosaic_0001>
module attributes {stable_mosaic.version = 11 : i64} {
  func.func @kernel(%arg0: i32, %arg1: memref<8x8xf32, #tpu.memory_space<vmem>>, %arg2: memref<1x384xf32, #tpu.memory_space<vmem>>, %arg3: memref<128x384xf32, #tpu.memory_space<vmem>>, %arg4: memref<1x384xf32, #tpu.memory_space<vmem>>, %arg5: memref<1x128xf32, #tpu.memory_space<vmem>>, %arg6: memref<1x128xf32, #tpu.memory_space<vmem>>, %arg7: memref<1x1xf32, #tpu.memory_space<vmem>>, %arg8: memref<8x1xf32, #tpu.memory_space<vmem>>, %arg9: memref<8x8x384xf32, #tpu.memory_space<vmem>>) attributes {dimension_semantics = [#tpu.dimension_semantics<parallel>], iteration_bounds = array<i64: 1>, scalar_prefetch = 0 : i64, scratch_operands = 1 : i64, tpu.core_type = #tpu.core_type<tc>, window_params = [{transform_indices = @transform_0, window_bounds = array<i64: 8, 8>}, {pipeline_mode = #tpu.pipeline_mode<synchronous>, transform_indices = @transform_1, window_bounds = array<i64: 1, 384>}, {pipeline_mode = #tpu.pipeline_mode<synchronous>, transform_indices = @transform_2, window_bounds = array<i64: 128, 384>}, {pipeline_mode = #tpu.pipeline_mode<synchronous>, transform_indices = @transform_3, window_bounds = array<i64: 1, 384>}, {pipeline_mode = #tpu.pipeline_mode<synchronous>, transform_indices = @transform_4, window_bounds = array<i64: 1, 128>}, {pipeline_mode = #tpu.pipeline_mode<synchronous>, transform_indices = @transform_5, window_bounds = array<i64: 1, 128>}, {pipeline_mode = #tpu.pipeline_mode<synchronous>, transform_indices = @transform_6, window_bounds = array<i64: 1, 1>}, {transform_indices = @transform_7, window_bounds = array<i64: 8, 1>}]} {
    %c0 = arith.constant 0 : index
    %c0_0 = arith.constant 0 : index
    %0 = vector.load %arg2[%c0, %c0_0] : memref<1x384xf32, #tpu.memory_space<vmem>>, vector<1x384xf32>
    %c0_1 = arith.constant 0 : index
    %c0_2 = arith.constant 0 : index
    %1 = vector.load %arg4[%c0_1, %c0_2] : memref<1x384xf32, #tpu.memory_space<vmem>>, vector<1x384xf32>
    %c0_3 = arith.constant 0 : index
    %c0_4 = arith.constant 0 : index
    %2 = vector.load %arg5[%c0_3, %c0_4] : memref<1x128xf32, #tpu.memory_space<vmem>>, vector<1x128xf32>
    %c0_5 = arith.constant 0 : index
    %c0_6 = arith.constant 0 : index
    %3 = vector.load %arg3[%c0_5, %c0_6] : memref<128x384xf32, #tpu.memory_space<vmem>>, vector<128x384xf32>
    %c0_7 = arith.constant 0 : index
    %c0_8 = arith.constant 0 : index
    %4 = vector.load %arg1[%c0_7, %c0_8] : memref<8x8xf32, #tpu.memory_space<vmem>>, vector<8x8xf32>
    %5 = vector.shape_cast %4 : vector<8x8xf32> to vector<8x8x1xf32>
    %6 = vector.shape_cast %0 : vector<1x384xf32> to vector<1x1x384xf32>
    %7 = vector.broadcast %5 : vector<8x8x1xf32> to vector<8x8x384xf32>
    %8 = vector.broadcast %6 : vector<1x1x384xf32> to vector<8x8x384xf32>
    %9 = arith.mulf %7, %8 : vector<8x8x384xf32>
    %10 = vector.shape_cast %1 : vector<1x384xf32> to vector<1x1x384xf32>
    %11 = vector.broadcast %10 : vector<1x1x384xf32> to vector<8x8x384xf32>
    %12 = arith.addf %9, %11 : vector<8x8x384xf32>
    %c0_9 = arith.constant 0 : index
    %c0_10 = arith.constant 0 : index
    %c0_11 = arith.constant 0 : index
    %13 = vector.load %arg9[%c0_9, %c0_10, %c0_11] : memref<8x8x384xf32, #tpu.memory_space<vmem>>, vector<8x8x384xf32>
    tpu.vector_store %arg9[%c0_9, %c0_10, %c0_11], %12 {strides = array<i32>} : memref<8x8x384xf32, #tpu.memory_space<vmem>>, vector<8x8x384xf32>,
    %cst = arith.constant 0.000000e+00 : f32
    %14 = vector.broadcast %cst : f32 to vector<8x128xf32>
    %c0_i32 = arith.constant 0 : i32
    %15 = arith.index_cast %c0_i32 : i32 to index
    %c0_12 = arith.constant 0 : index
    %c0_13 = arith.constant 0 : index
    %16 = vector.load %arg9[%15, %c0_12, %c0_13] : memref<8x8x384xf32, #tpu.memory_space<vmem>>, vector<1x8x384xf32>
    %17 = vector.shape_cast %16 : vector<1x8x384xf32> to vector<8x384xf32>
    %cst_14 = arith.constant dense<0.000000e+00> : vector<8x384xf32>
    %18 = tpu.matmul %14, %3, %cst_14 {dimension_numbers = #tpu.dot_dimension_numbers<[1], [0], [0], [1], [0, 0, 1, 1], [], []>} : vector<8x128xf32>, vector<128x384xf32>, vector<8x384xf32> -> vector<8x384xf32>
    %19 = vector.extract_strided_slice %17 {offsets = [0, 0], sizes = [8, 128], strides = [1, 1]} : vector<8x384xf32> to vector<8x128xf32>
    %20 = vector.extract_strided_slice %18 {offsets = [0, 0], sizes = [8, 128], strides = [1, 1]} : vector<8x384xf32> to vector<8x128xf32>
    %21 = arith.addf %19, %20 : vector<8x128xf32>
    %22 = arith.negf %21 : vector<8x128xf32>
    %23 = math.exp %22 : vector<8x128xf32>
    %cst_15 = arith.constant 1.000000e+00 : f32
    %24 = vector.broadcast %cst_15 : f32 to vector<8x128xf32>
    %25 = arith.addf %24, %23 : vector<8x128xf32>
    %26 = arith.divf %24, %25 : vector<8x128xf32>
    %27 = vector.extract_strided_slice %17 {offsets = [0, 128], sizes = [8, 128], strides = [1, 1]} : vector<8x384xf32> to vector<8x128xf32>
    %28 = vector.extract_strided_slice %18 {offsets = [0, 128], sizes = [8, 128], strides = [1, 1]} : vector<8x384xf32> to vector<8x128xf32>
    %29 = arith.addf %27, %28 : vector<8x128xf32>
    %30 = arith.negf %29 : vector<8x128xf32>
    %31 = math.exp %30 : vector<8x128xf32>
    %cst_16 = arith.constant 1.000000e+00 : f32
    %32 = vector.broadcast %cst_16 : f32 to vector<8x128xf32>
    %33 = arith.addf %32, %31 : vector<8x128xf32>
    %34 = arith.divf %32, %33 : vector<8x128xf32>
    %35 = vector.extract_strided_slice %17 {offsets = [0, 256], sizes = [8, 128], strides = [1, 1]} : vector<8x384xf32> to vector<8x128xf32>
    %36 = vector.extract_strided_slice %18 {offsets = [0, 256], sizes = [8, 128], strides = [1, 1]} : vector<8x384xf32> to vector<8x128xf32>
    %37 = vector.broadcast %2 : vector<1x128xf32> to vector<8x128xf32>
    %38 = arith.addf %36, %37 : vector<8x128xf32>
    %39 = arith.mulf %26, %38 : vector<8x128xf32>
    %40 = arith.addf %35, %39 : vector<8x128xf32>
    %41 = math.tanh %40 : vector<8x128xf32>
    %cst_17 = arith.constant 1.000000e+00 : f32
    %42 = vector.broadcast %cst_17 : f32 to vector<8x128xf32>
    %43 = arith.subf %42, %34 : vector<8x128xf32>
    %44 = arith.mulf %43, %41 : vector<8x128xf32>
    %45 = arith.mulf %34, %14 : vector<8x128xf32>
    %46 = arith.addf %44, %45 : vector<8x128xf32>
    %c1_i32 = arith.constant 1 : i32
    %47 = arith.index_cast %c1_i32 : i32 to index
    %c0_18 = arith.constant 0 : index
    %c0_19 = arith.constant 0 : index
    %48 = vector.load %arg9[%47, %c0_18, %c0_19] : memref<8x8x384xf32, #tpu.memory_space<vmem>>, vector<1x8x384xf32>
    %49 = vector.shape_cast %48 : vector<1x8x384xf32> to vector<8x384xf32>
    %cst_20 = arith.constant dense<0.000000e+00> : vector<8x384xf32>
    %50 = tpu.matmul %46, %3, %cst_20 {dimension_numbers = #tpu.dot_dimension_numbers<[1], [0], [0], [1], [0, 0, 1, 1], [], []>} : vector<8x128xf32>, vector<128x384xf32>, vector<8x384xf32> -> vector<8x384xf32>
    %51 = vector.extract_strided_slice %49 {offsets = [0, 0], sizes = [8, 128], strides = [1, 1]} : vector<8x384xf32> to vector<8x128xf32>
    %52 = vector.extract_strided_slice %50 {offsets = [0, 0], sizes = [8, 128], strides = [1, 1]} : vector<8x384xf32> to vector<8x128xf32>
    %53 = arith.addf %51, %52 : vector<8x128xf32>
    %54 = arith.negf %53 : vector<8x128xf32>
    %55 = math.exp %54 : vector<8x128xf32>
    %cst_21 = arith.constant 1.000000e+00 : f32
    %56 = vector.broadcast %cst_21 : f32 to vector<8x128xf32>
    %57 = arith.addf %56, %55 : vector<8x128xf32>
    %58 = arith.divf %56, %57 : vector<8x128xf32>
    %59 = vector.extract_strided_slice %49 {offsets = [0, 128], sizes = [8, 128], strides = [1, 1]} : vector<8x384xf32> to vector<8x128xf32>
    %60 = vector.extract_strided_slice %50 {offsets = [0, 128], sizes = [8, 128], strides = [1, 1]} : vector<8x384xf32> to vector<8x128xf32>
    %61 = arith.addf %59, %60 : vector<8x128xf32>
    %62 = arith.negf %61 : vector<8x128xf32>
    %63 = math.exp %62 : vector<8x128xf32>
    %cst_22 = arith.constant 1.000000e+00 : f32
    %64 = vector.broadcast %cst_22 : f32 to vector<8x128xf32>
    %65 = arith.addf %64, %63 : vector<8x128xf32>
    %66 = arith.divf %64, %65 : vector<8x128xf32>
    %67 = vector.extract_strided_slice %49 {offsets = [0, 256], sizes = [8, 128], strides = [1, 1]} : vector<8x384xf32> to vector<8x128xf32>
    %68 = vector.extract_strided_slice %50 {offsets = [0, 256], sizes = [8, 128], strides = [1, 1]} : vector<8x384xf32> to vector<8x128xf32>
    %69 = vector.broadcast %2 : vector<1x128xf32> to vector<8x128xf32>
    %70 = arith.addf %68, %69 : vector<8x128xf32>
    %71 = arith.mulf %58, %70 : vector<8x128xf32>
    %72 = arith.addf %67, %71 : vector<8x128xf32>
    %73 = math.tanh %72 : vector<8x128xf32>
    %cst_23 = arith.constant 1.000000e+00 : f32
    %74 = vector.broadcast %cst_23 : f32 to vector<8x128xf32>
    %75 = arith.subf %74, %66 : vector<8x128xf32>
    %76 = arith.mulf %75, %73 : vector<8x128xf32>
    %77 = arith.mulf %66, %46 : vector<8x128xf32>
    %78 = arith.addf %76, %77 : vector<8x128xf32>
    %c2_i32 = arith.constant 2 : i32
    %79 = arith.index_cast %c2_i32 : i32 to index
    %c0_24 = arith.constant 0 : index
    %c0_25 = arith.constant 0 : index
    %80 = vector.load %arg9[%79, %c0_24, %c0_25] : memref<8x8x384xf32, #tpu.memory_space<vmem>>, vector<1x8x384xf32>
    %81 = vector.shape_cast %80 : vector<1x8x384xf32> to vector<8x384xf32>
    %cst_26 = arith.constant dense<0.000000e+00> : vector<8x384xf32>
    %82 = tpu.matmul %78, %3, %cst_26 {dimension_numbers = #tpu.dot_dimension_numbers<[1], [0], [0], [1], [0, 0, 1, 1], [], []>} : vector<8x128xf32>, vector<128x384xf32>, vector<8x384xf32> -> vector<8x384xf32>
    %83 = vector.extract_strided_slice %81 {offsets = [0, 0], sizes = [8, 128], strides = [1, 1]} : vector<8x384xf32> to vector<8x128xf32>
    %84 = vector.extract_strided_slice %82 {offsets = [0, 0], sizes = [8, 128], strides = [1, 1]} : vector<8x384xf32> to vector<8x128xf32>
    %85 = arith.addf %83, %84 : vector<8x128xf32>
    %86 = arith.negf %85 : vector<8x128xf32>
    %87 = math.exp %86 : vector<8x128xf32>
    %cst_27 = arith.constant 1.000000e+00 : f32
    %88 = vector.broadcast %cst_27 : f32 to vector<8x128xf32>
    %89 = arith.addf %88, %87 : vector<8x128xf32>
    %90 = arith.divf %88, %89 : vector<8x128xf32>
    %91 = vector.extract_strided_slice %81 {offsets = [0, 128], sizes = [8, 128], strides = [1, 1]} : vector<8x384xf32> to vector<8x128xf32>
    %92 = vector.extract_strided_slice %82 {offsets = [0, 128], sizes = [8, 128], strides = [1, 1]} : vector<8x384xf32> to vector<8x128xf32>
    %93 = arith.addf %91, %92 : vector<8x128xf32>
    %94 = arith.negf %93 : vector<8x128xf32>
    %95 = math.exp %94 : vector<8x128xf32>
    %cst_28 = arith.constant 1.000000e+00 : f32
    %96 = vector.broadcast %cst_28 : f32 to vector<8x128xf32>
    %97 = arith.addf %96, %95 : vector<8x128xf32>
    %98 = arith.divf %96, %97 : vector<8x128xf32>
    %99 = vector.extract_strided_slice %81 {offsets = [0, 256], sizes = [8, 128], strides = [1, 1]} : vector<8x384xf32> to vector<8x128xf32>
    %100 = vector.extract_strided_slice %82 {offsets = [0, 256], sizes = [8, 128], strides = [1, 1]} : vector<8x384xf32> to vector<8x128xf32>
    %101 = vector.broadcast %2 : vector<1x128xf32> to vector<8x128xf32>
    %102 = arith.addf %100, %101 : vector<8x128xf32>
    %103 = arith.mulf %90, %102 : vector<8x128xf32>
    %104 = arith.addf %99, %103 : vector<8x128xf32>
    %105 = math.tanh %104 : vector<8x128xf32>
    %cst_29 = arith.constant 1.000000e+00 : f32
    %106 = vector.broadcast %cst_29 : f32 to vector<8x128xf32>
    %107 = arith.subf %106, %98 : vector<8x128xf32>
    %108 = arith.mulf %107, %105 : vector<8x128xf32>
    %109 = arith.mulf %98, %78 : vector<8x128xf32>
    %110 = arith.addf %108, %109 : vector<8x128xf32>
    %c3_i32 = arith.constant 3 : i32
    %111 = arith.index_cast %c3_i32 : i32 to index
    %c0_30 = arith.constant 0 : index
    %c0_31 = arith.constant 0 : index
    %112 = vector.load %arg9[%111, %c0_30, %c0_31] : memref<8x8x384xf32, #tpu.memory_space<vmem>>, vector<1x8x384xf32>
    %113 = vector.shape_cast %112 : vector<1x8x384xf32> to vector<8x384xf32>
    %cst_32 = arith.constant dense<0.000000e+00> : vector<8x384xf32>
    %114 = tpu.matmul %110, %3, %cst_32 {dimension_numbers = #tpu.dot_dimension_numbers<[1], [0], [0], [1], [0, 0, 1, 1], [], []>} : vector<8x128xf32>, vector<128x384xf32>, vector<8x384xf32> -> vector<8x384xf32>
    %115 = vector.extract_strided_slice %113 {offsets = [0, 0], sizes = [8, 128], strides = [1, 1]} : vector<8x384xf32> to vector<8x128xf32>
    %116 = vector.extract_strided_slice %114 {offsets = [0, 0], sizes = [8, 128], strides = [1, 1]} : vector<8x384xf32> to vector<8x128xf32>
    %117 = arith.addf %115, %116 : vector<8x128xf32>
    %118 = arith.negf %117 : vector<8x128xf32>
    %119 = math.exp %118 : vector<8x128xf32>
    %cst_33 = arith.constant 1.000000e+00 : f32
    %120 = vector.broadcast %cst_33 : f32 to vector<8x128xf32>
    %121 = arith.addf %120, %119 : vector<8x128xf32>
    %122 = arith.divf %120, %121 : vector<8x128xf32>
    %123 = vector.extract_strided_slice %113 {offsets = [0, 128], sizes = [8, 128], strides = [1, 1]} : vector<8x384xf32> to vector<8x128xf32>
    %124 = vector.extract_strided_slice %114 {offsets = [0, 128], sizes = [8, 128], strides = [1, 1]} : vector<8x384xf32> to vector<8x128xf32>
    %125 = arith.addf %123, %124 : vector<8x128xf32>
    %126 = arith.negf %125 : vector<8x128xf32>
    %127 = math.exp %126 : vector<8x128xf32>
    %cst_34 = arith.constant 1.000000e+00 : f32
    %128 = vector.broadcast %cst_34 : f32 to vector<8x128xf32>
    %129 = arith.addf %128, %127 : vector<8x128xf32>
    %130 = arith.divf %128, %129 : vector<8x128xf32>
    %131 = vector.extract_strided_slice %113 {offsets = [0, 256], sizes = [8, 128], strides = [1, 1]} : vector<8x384xf32> to vector<8x128xf32>
    %132 = vector.extract_strided_slice %114 {offsets = [0, 256], sizes = [8, 128], strides = [1, 1]} : vector<8x384xf32> to vector<8x128xf32>
    %133 = vector.broadcast %2 : vector<1x128xf32> to vector<8x128xf32>
    %134 = arith.addf %132, %133 : vector<8x128xf32>
    %135 = arith.mulf %122, %134 : vector<8x128xf32>
    %136 = arith.addf %131, %135 : vector<8x128xf32>
    %137 = math.tanh %136 : vector<8x128xf32>
    %cst_35 = arith.constant 1.000000e+00 : f32
    %138 = vector.broadcast %cst_35 : f32 to vector<8x128xf32>
    %139 = arith.subf %138, %130 : vector<8x128xf32>
    %140 = arith.mulf %139, %137 : vector<8x128xf32>
    %141 = arith.mulf %130, %110 : vector<8x128xf32>
    %142 = arith.addf %140, %141 : vector<8x128xf32>
    %c4_i32 = arith.constant 4 : i32
    %143 = arith.index_cast %c4_i32 : i32 to index
    %c0_36 = arith.constant 0 : index
    %c0_37 = arith.constant 0 : index
    %144 = vector.load %arg9[%143, %c0_36, %c0_37] : memref<8x8x384xf32, #tpu.memory_space<vmem>>, vector<1x8x384xf32>
    %145 = vector.shape_cast %144 : vector<1x8x384xf32> to vector<8x384xf32>
    %cst_38 = arith.constant dense<0.000000e+00> : vector<8x384xf32>
    %146 = tpu.matmul %142, %3, %cst_38 {dimension_numbers = #tpu.dot_dimension_numbers<[1], [0], [0], [1], [0, 0, 1, 1], [], []>} : vector<8x128xf32>, vector<128x384xf32>, vector<8x384xf32> -> vector<8x384xf32>
    %147 = vector.extract_strided_slice %145 {offsets = [0, 0], sizes = [8, 128], strides = [1, 1]} : vector<8x384xf32> to vector<8x128xf32>
    %148 = vector.extract_strided_slice %146 {offsets = [0, 0], sizes = [8, 128], strides = [1, 1]} : vector<8x384xf32> to vector<8x128xf32>
    %149 = arith.addf %147, %148 : vector<8x128xf32>
    %150 = arith.negf %149 : vector<8x128xf32>
    %151 = math.exp %150 : vector<8x128xf32>
    %cst_39 = arith.constant 1.000000e+00 : f32
    %152 = vector.broadcast %cst_39 : f32 to vector<8x128xf32>
    %153 = arith.addf %152, %151 : vector<8x128xf32>
    %154 = arith.divf %152, %153 : vector<8x128xf32>
    %155 = vector.extract_strided_slice %145 {offsets = [0, 128], sizes = [8, 128], strides = [1, 1]} : vector<8x384xf32> to vector<8x128xf32>
    %156 = vector.extract_strided_slice %146 {offsets = [0, 128], sizes = [8, 128], strides = [1, 1]} : vector<8x384xf32> to vector<8x128xf32>
    %157 = arith.addf %155, %156 : vector<8x128xf32>
    %158 = arith.negf %157 : vector<8x128xf32>
    %159 = math.exp %158 : vector<8x128xf32>
    %cst_40 = arith.constant 1.000000e+00 : f32
    %160 = vector.broadcast %cst_40 : f32 to vector<8x128xf32>
    %161 = arith.addf %160, %159 : vector<8x128xf32>
    %162 = arith.divf %160, %161 : vector<8x128xf32>
    %163 = vector.extract_strided_slice %145 {offsets = [0, 256], sizes = [8, 128], strides = [1, 1]} : vector<8x384xf32> to vector<8x128xf32>
    %164 = vector.extract_strided_slice %146 {offsets = [0, 256], sizes = [8, 128], strides = [1, 1]} : vector<8x384xf32> to vector<8x128xf32>
    %165 = vector.broadcast %2 : vector<1x128xf32> to vector<8x128xf32>
    %166 = arith.addf %164, %165 : vector<8x128xf32>
    %167 = arith.mulf %154, %166 : vector<8x128xf32>
    %168 = arith.addf %163, %167 : vector<8x128xf32>
    %169 = math.tanh %168 : vector<8x128xf32>
    %cst_41 = arith.constant 1.000000e+00 : f32
    %170 = vector.broadcast %cst_41 : f32 to vector<8x128xf32>
    %171 = arith.subf %170, %162 : vector<8x128xf32>
    %172 = arith.mulf %171, %169 : vector<8x128xf32>
    %173 = arith.mulf %162, %142 : vector<8x128xf32>
    %174 = arith.addf %172, %173 : vector<8x128xf32>
    %c5_i32 = arith.constant 5 : i32
    %175 = arith.index_cast %c5_i32 : i32 to index
    %c0_42 = arith.constant 0 : index
    %c0_43 = arith.constant 0 : index
    %176 = vector.load %arg9[%175, %c0_42, %c0_43] : memref<8x8x384xf32, #tpu.memory_space<vmem>>, vector<1x8x384xf32>
    %177 = vector.shape_cast %176 : vector<1x8x384xf32> to vector<8x384xf32>
    %cst_44 = arith.constant dense<0.000000e+00> : vector<8x384xf32>
    %178 = tpu.matmul %174, %3, %cst_44 {dimension_numbers = #tpu.dot_dimension_numbers<[1], [0], [0], [1], [0, 0, 1, 1], [], []>} : vector<8x128xf32>, vector<128x384xf32>, vector<8x384xf32> -> vector<8x384xf32>
    %179 = vector.extract_strided_slice %177 {offsets = [0, 0], sizes = [8, 128], strides = [1, 1]} : vector<8x384xf32> to vector<8x128xf32>
    %180 = vector.extract_strided_slice %178 {offsets = [0, 0], sizes = [8, 128], strides = [1, 1]} : vector<8x384xf32> to vector<8x128xf32>
    %181 = arith.addf %179, %180 : vector<8x128xf32>
    %182 = arith.negf %181 : vector<8x128xf32>
    %183 = math.exp %182 : vector<8x128xf32>
    %cst_45 = arith.constant 1.000000e+00 : f32
    %184 = vector.broadcast %cst_45 : f32 to vector<8x128xf32>
    %185 = arith.addf %184, %183 : vector<8x128xf32>
    %186 = arith.divf %184, %185 : vector<8x128xf32>
    %187 = vector.extract_strided_slice %177 {offsets = [0, 128], sizes = [8, 128], strides = [1, 1]} : vector<8x384xf32> to vector<8x128xf32>
    %188 = vector.extract_strided_slice %178 {offsets = [0, 128], sizes = [8, 128], strides = [1, 1]} : vector<8x384xf32> to vector<8x128xf32>
    %189 = arith.addf %187, %188 : vector<8x128xf32>
    %190 = arith.negf %189 : vector<8x128xf32>
    %191 = math.exp %190 : vector<8x128xf32>
    %cst_46 = arith.constant 1.000000e+00 : f32
    %192 = vector.broadcast %cst_46 : f32 to vector<8x128xf32>
    %193 = arith.addf %192, %191 : vector<8x128xf32>
    %194 = arith.divf %192, %193 : vector<8x128xf32>
    %195 = vector.extract_strided_slice %177 {offsets = [0, 256], sizes = [8, 128], strides = [1, 1]} : vector<8x384xf32> to vector<8x128xf32>
    %196 = vector.extract_strided_slice %178 {offsets = [0, 256], sizes = [8, 128], strides = [1, 1]} : vector<8x384xf32> to vector<8x128xf32>
    %197 = vector.broadcast %2 : vector<1x128xf32> to vector<8x128xf32>
    %198 = arith.addf %196, %197 : vector<8x128xf32>
    %199 = arith.mulf %186, %198 : vector<8x128xf32>
    %200 = arith.addf %195, %199 : vector<8x128xf32>
    %201 = math.tanh %200 : vector<8x128xf32>
    %cst_47 = arith.constant 1.000000e+00 : f32
    %202 = vector.broadcast %cst_47 : f32 to vector<8x128xf32>
    %203 = arith.subf %202, %194 : vector<8x128xf32>
    %204 = arith.mulf %203, %201 : vector<8x128xf32>
    %205 = arith.mulf %194, %174 : vector<8x128xf32>
    %206 = arith.addf %204, %205 : vector<8x128xf32>
    %c6_i32 = arith.constant 6 : i32
    %207 = arith.index_cast %c6_i32 : i32 to index
    %c0_48 = arith.constant 0 : index
    %c0_49 = arith.constant 0 : index
    %208 = vector.load %arg9[%207, %c0_48, %c0_49] : memref<8x8x384xf32, #tpu.memory_space<vmem>>, vector<1x8x384xf32>
    %209 = vector.shape_cast %208 : vector<1x8x384xf32> to vector<8x384xf32>
    %cst_50 = arith.constant dense<0.000000e+00> : vector<8x384xf32>
    %210 = tpu.matmul %206, %3, %cst_50 {dimension_numbers = #tpu.dot_dimension_numbers<[1], [0], [0], [1], [0, 0, 1, 1], [], []>} : vector<8x128xf32>, vector<128x384xf32>, vector<8x384xf32> -> vector<8x384xf32>
    %211 = vector.extract_strided_slice %209 {offsets = [0, 0], sizes = [8, 128], strides = [1, 1]} : vector<8x384xf32> to vector<8x128xf32>
    %212 = vector.extract_strided_slice %210 {offsets = [0, 0], sizes = [8, 128], strides = [1, 1]} : vector<8x384xf32> to vector<8x128xf32>
    %213 = arith.addf %211, %212 : vector<8x128xf32>
    %214 = arith.negf %213 : vector<8x128xf32>
    %215 = math.exp %214 : vector<8x128xf32>
    %cst_51 = arith.constant 1.000000e+00 : f32
    %216 = vector.broadcast %cst_51 : f32 to vector<8x128xf32>
    %217 = arith.addf %216, %215 : vector<8x128xf32>
    %218 = arith.divf %216, %217 : vector<8x128xf32>
    %219 = vector.extract_strided_slice %209 {offsets = [0, 128], sizes = [8, 128], strides = [1, 1]} : vector<8x384xf32> to vector<8x128xf32>
    %220 = vector.extract_strided_slice %210 {offsets = [0, 128], sizes = [8, 128], strides = [1, 1]} : vector<8x384xf32> to vector<8x128xf32>
    %221 = arith.addf %219, %220 : vector<8x128xf32>
    %222 = arith.negf %221 : vector<8x128xf32>
    %223 = math.exp %222 : vector<8x128xf32>
    %cst_52 = arith.constant 1.000000e+00 : f32
    %224 = vector.broadcast %cst_52 : f32 to vector<8x128xf32>
    %225 = arith.addf %224, %223 : vector<8x128xf32>
    %226 = arith.divf %224, %225 : vector<8x128xf32>
    %227 = vector.extract_strided_slice %209 {offsets = [0, 256], sizes = [8, 128], strides = [1, 1]} : vector<8x384xf32> to vector<8x128xf32>
    %228 = vector.extract_strided_slice %210 {offsets = [0, 256], sizes = [8, 128], strides = [1, 1]} : vector<8x384xf32> to vector<8x128xf32>
    %229 = vector.broadcast %2 : vector<1x128xf32> to vector<8x128xf32>
    %230 = arith.addf %228, %229 : vector<8x128xf32>
    %231 = arith.mulf %218, %230 : vector<8x128xf32>
    %232 = arith.addf %227, %231 : vector<8x128xf32>
    %233 = math.tanh %232 : vector<8x128xf32>
    %cst_53 = arith.constant 1.000000e+00 : f32
    %234 = vector.broadcast %cst_53 : f32 to vector<8x128xf32>
    %235 = arith.subf %234, %226 : vector<8x128xf32>
    %236 = arith.mulf %235, %233 : vector<8x128xf32>
    %237 = arith.mulf %226, %206 : vector<8x128xf32>
    %238 = arith.addf %236, %237 : vector<8x128xf32>
    %c7_i32 = arith.constant 7 : i32
    %239 = arith.index_cast %c7_i32 : i32 to index
    %c0_54 = arith.constant 0 : index
    %c0_55 = arith.constant 0 : index
    %240 = vector.load %arg9[%239, %c0_54, %c0_55] : memref<8x8x384xf32, #tpu.memory_space<vmem>>, vector<1x8x384xf32>
    %241 = vector.shape_cast %240 : vector<1x8x384xf32> to vector<8x384xf32>
    %cst_56 = arith.constant dense<0.000000e+00> : vector<8x384xf32>
    %242 = tpu.matmul %238, %3, %cst_56 {dimension_numbers = #tpu.dot_dimension_numbers<[1], [0], [0], [1], [0, 0, 1, 1], [], []>} : vector<8x128xf32>, vector<128x384xf32>, vector<8x384xf32> -> vector<8x384xf32>
    %243 = vector.extract_strided_slice %241 {offsets = [0, 0], sizes = [8, 128], strides = [1, 1]} : vector<8x384xf32> to vector<8x128xf32>
    %244 = vector.extract_strided_slice %242 {offsets = [0, 0], sizes = [8, 128], strides = [1, 1]} : vector<8x384xf32> to vector<8x128xf32>
    %245 = arith.addf %243, %244 : vector<8x128xf32>
    %246 = arith.negf %245 : vector<8x128xf32>
    %247 = math.exp %246 : vector<8x128xf32>
    %cst_57 = arith.constant 1.000000e+00 : f32
    %248 = vector.broadcast %cst_57 : f32 to vector<8x128xf32>
    %249 = arith.addf %248, %247 : vector<8x128xf32>
    %250 = arith.divf %248, %249 : vector<8x128xf32>
    %251 = vector.extract_strided_slice %241 {offsets = [0, 128], sizes = [8, 128], strides = [1, 1]} : vector<8x384xf32> to vector<8x128xf32>
    %252 = vector.extract_strided_slice %242 {offsets = [0, 128], sizes = [8, 128], strides = [1, 1]} : vector<8x384xf32> to vector<8x128xf32>
    %253 = arith.addf %251, %252 : vector<8x128xf32>
    %254 = arith.negf %253 : vector<8x128xf32>
    %255 = math.exp %254 : vector<8x128xf32>
    %cst_58 = arith.constant 1.000000e+00 : f32
    %256 = vector.broadcast %cst_58 : f32 to vector<8x128xf32>
    %257 = arith.addf %256, %255 : vector<8x128xf32>
    %258 = arith.divf %256, %257 : vector<8x128xf32>
    %259 = vector.extract_strided_slice %241 {offsets = [0, 256], sizes = [8, 128], strides = [1, 1]} : vector<8x384xf32> to vector<8x128xf32>
    %260 = vector.extract_strided_slice %242 {offsets = [0, 256], sizes = [8, 128], strides = [1, 1]} : vector<8x384xf32> to vector<8x128xf32>
    %261 = vector.broadcast %2 : vector<1x128xf32> to vector<8x128xf32>
    %262 = arith.addf %260, %261 : vector<8x128xf32>
    %263 = arith.mulf %250, %262 : vector<8x128xf32>
    %264 = arith.addf %259, %263 : vector<8x128xf32>
    %265 = math.tanh %264 : vector<8x128xf32>
    %cst_59 = arith.constant 1.000000e+00 : f32
    %266 = vector.broadcast %cst_59 : f32 to vector<8x128xf32>
    %267 = arith.subf %266, %258 : vector<8x128xf32>
    %268 = arith.mulf %267, %265 : vector<8x128xf32>
    %269 = arith.mulf %258, %238 : vector<8x128xf32>
    %270 = arith.addf %268, %269 : vector<8x128xf32>
    %c8_i32 = arith.constant 8 : i32
    %c0_60 = arith.constant 0 : index
    %c0_61 = arith.constant 0 : index
    %271 = vector.load %arg6[%c0_60, %c0_61] : memref<1x128xf32, #tpu.memory_space<vmem>>, vector<1x128xf32>
    %272 = vector.broadcast %271 : vector<1x128xf32> to vector<8x128xf32>
    %273 = arith.mulf %270, %272 : vector<8x128xf32>
    %cst_62 = arith.constant dense<0.000000e+00> : vector<8xf32>
    %274 = vector.multi_reduction <add>, %273, %cst_62 [1] : vector<8x128xf32> to vector<8xf32>
    %275 = vector.shape_cast %274 : vector<8xf32> to vector<8x1xf32>
    %c0_63 = arith.constant 0 : index
    %c0_64 = arith.constant 0 : index
    %276 = vector.load %arg7[%c0_63, %c0_64] : memref<1x1xf32, #tpu.memory_space<vmem>>, vector<1x1xf32>
    %277 = vector.broadcast %276 : vector<1x1xf32> to vector<8x1xf32>
    %278 = arith.addf %275, %277 : vector<8x1xf32>
    %c0_65 = arith.constant 0 : index
    %c0_66 = arith.constant 0 : index
    %279 = vector.load %arg8[%c0_65, %c0_66] : memref<8x1xf32, #tpu.memory_space<vmem>>, vector<8x1xf32>
    tpu.vector_store %arg8[%c0_65, %c0_66], %278 {strides = array<i32>} : memref<8x1xf32, #tpu.memory_space<vmem>>, vector<8x1xf32>,
    return
  }
  func.func @transform_0(%arg0: i32) -> (i32, i32) {
    %c0_i32 = arith.constant 0 : i32
    %c0_i32_0 = arith.constant 0 : i32
    return %c0_i32, %arg0 : i32, i32
  }
  func.func @transform_1(%arg0: i32) -> (i32, i32) {
    %c0_i32 = arith.constant 0 : i32
    %c0_i32_0 = arith.constant 0 : i32
    %c0_i32_1 = arith.constant 0 : i32
    return %c0_i32, %c0_i32_0 : i32, i32
  }
  func.func @transform_2(%arg0: i32) -> (i32, i32) {
    %c0_i32 = arith.constant 0 : i32
    %c0_i32_0 = arith.constant 0 : i32
    %c0_i32_1 = arith.constant 0 : i32
    return %c0_i32, %c0_i32_0 : i32, i32
  }
  func.func @transform_3(%arg0: i32) -> (i32, i32) {
    %c0_i32 = arith.constant 0 : i32
    %c0_i32_0 = arith.constant 0 : i32
    %c0_i32_1 = arith.constant 0 : i32
    return %c0_i32, %c0_i32_0 : i32, i32
  }
  func.func @transform_4(%arg0: i32) -> (i32, i32) {
    %c0_i32 = arith.constant 0 : i32
    %c0_i32_0 = arith.constant 0 : i32
    %c0_i32_1 = arith.constant 0 : i32
    return %c0_i32, %c0_i32_0 : i32, i32
  }
  func.func @transform_5(%arg0: i32) -> (i32, i32) {
    %c0_i32 = arith.constant 0 : i32
    %c0_i32_0 = arith.constant 0 : i32
    %c0_i32_1 = arith.constant 0 : i32
    return %c0_i32, %c0_i32_0 : i32, i32
  }
  func.func @transform_6(%arg0: i32) -> (i32, i32) {
    %c0_i32 = arith.constant 0 : i32
    %c0_i32_0 = arith.constant 0 : i32
    %c0_i32_1 = arith.constant 0 : i32
    return %c0_i32, %c0_i32_0 : i32, i32
  }
  func.func @transform_7(%arg0: i32) -> (i32, i32) {
    %c0_i32 = arith.constant 0 : i32
    %c0_i32_0 = arith.constant 0 : i32
    return %arg0, %c0_i32 : i32, i32
  }
}

</mosaic_0001>

<bundles_post_ra>
// kernel: tpu_custom_call.1
= control target key start
LH: loop header
LB: loop body
LE: loop exit
PB: predicated region body
PF: predicated region fallthrough
CT: control target
= control target key end

     0   :  { %s2137_s0 = inlined_call_operand.hbm [shape: f32[8,8], index: 0, kind: input, shape index: {}]   ;;  %s2138_s1 = inlined_call_operand.hbm [shape: f32[1,384], index: 1, kind: input, shape index: {}]   ;;  %s2139_s2 = inlined_call_operand.hbm [shape: f32[128,384], index: 2, kind: input, shape index: {}]   ;;  %s2140_s3 = inlined_call_operand.vmem [shape: f32[1,384], index: 3, kind: input, shape index: {}]   ;;  %s2141_s4 = inlined_call_operand.vmem [shape: f32[1,128], index: 4, kind: input, shape index: {}]   ;;  %s2142_s5 = inlined_call_operand.vmem [shape: f32[1,128], index: 5, kind: input, shape index: {}]   ;;  %s2143_s6 = inlined_call_operand.<no memory space> [shape: f32[1,1], index: 6, kind: input, shape index: {}]   ;;  %s2144_s7 = inlined_call_operand.vmem [shape: f32[8,1], index: 7, kind: output, shape index: {}]  }
   0x1   :  { %v12_v0 = vstv %s2143_s6 }
   0x2   :  { %13 = vst [vmem:[#allocation3] sm:$0x1] %v12_v0 }
   0x3   :  { %14 = vsyncpa [#allocation5], 0 }
   0x4   :  { %15 = vsyncpa [#allocation7], 0  ;;  %s32_s28 = sshll.u32 %s2138_s1, 4  ;;  %s1417_s29 = smov [#allocation6]   ;;  %s33_s28 = int_to_ptr.hbm [resolvable:$true] %s32_s28 }
   0x5   :  { %s34_s30 = sshll.u32 %s1417_s29, 4  ;;  %s21_s10 = sshll.u32 %s2137_s0, 4  ;;  %s35_s30 = int_to_ptr.vmem [resolvable:$true] %s34_s30  ;;  %s22_s10 = int_to_ptr.hbm [resolvable:$true] %s21_s10 }
   0x6   :  { %37 = dma.hbm_to_vmem [thread:$0]  %s33_s28, 48, %s35_s30, [#allocation7]  }
   0x7   :  { %s1418_s11 = smov [#allocation4]   ;;  %s42_s14 = sshll.u32 %s2139_s2, 4  ;;  %s43_s14 = int_to_ptr.hbm [resolvable:$true] %s42_s14 }
   0x8   :  { %s23_s12 = sshll.u32 %s1418_s11, 4  ;;  %s1419_s1 = smov [#allocation8]   ;;  %s24_s12 = int_to_ptr.vmem [resolvable:$true] %s23_s12 }
   0x9   :  { %26 = dma.hbm_to_vmem [thread:$0]  %s22_s10, 128, %s24_s12, [#allocation5]  }
   0xa   :  { %s44_s15 = sshll.u32 %s1419_s1, 4  ;;  %s1420_s16 = smov 384   ;;  %s45_s15 = int_to_ptr.vmem [resolvable:$true] %s44_s15 }
   0xb   :  { %s1421_s17 = smov 24  }
   0xc   :  { %50 = dma.hbm_to_vmem [thread:$0]  %s43_s14, 6144, %s45_s15, [#allocation7], %s1420_s16, %s1420_s16, %s1421_s17  }
   0xd   :  { %1413 = dma.done.wait [#allocation5], 128  }
   0xe   :  { %1414 = vsyncadd [#allocation5], 4294967168 }
   0xf   :  { %1415 = dma.done.wait [#allocation7], 6192  }
  0x10   :  { %1416 = vsyncadd [#allocation7], 4294961104  ;;  %v124_v1 = vlaneseq  ;;  %v1475_v3 = vld [vmem:[#allocation8 + $0x168] sm:$0xff]  ;;  %v1477_v4 = vld [vmem:[#allocation8 + $0x170] sm:$0xff]  ;;  %v1422_v51 = vmov 0.0  }
  0x11   :  { %v1479_v5 = vld [vmem:[#allocation8 + $0x150] sm:$0xff]  ;;  %268 = vmatpush.msra.mxu0 %v1475_v3  ;;  %288 = vmatpush.msra.mxu1 %v1477_v4  ;;  %v1483_v6 = vld [vmem:[#allocation8 + $0x158] sm:$0xff]  ;;  %v1487_v8 = vld [vmem:[#allocation8 + $0x140] sm:$0xff] }
  0x12   :  { %v125_v2 = vshrl.u32 %v124_v1, 7  ;;  %v1485_v7 = vld [vmem:[#allocation8 + $0x138] sm:$0xff]  ;;  %383 = vmatpush.msra.mxu3 %v1475_v3  ;;  %v1492_v9 = vld [vmem:[#allocation8 + $0x120] sm:$0xff]  ;;  %v1494_v10 = vld [vmem:[#allocation8 + $0x128] sm:$0xff] }
  0x13   :  { %269 = vmatpush.msra.mxu0 %v1479_v5  ;;  %289 = vmatpush.msra.mxu1 %v1483_v6  ;;  %v1499_v11 = vld [vmem:[#allocation8 + $0x108] sm:$0xff]  ;;  %v1501_v12 = vld [vmem:[#allocation8 + $0x110] sm:$0xff]  ;;  %v1510_v15 = vld [vmem:[#allocation8 + $0xf8] sm:$0xff] }
  0x14   :  { %1205 = vset.pattern.permute.xlu0 %v125_v2  ;;  %1206 = vset.pattern.permute.xlu1 %v125_v2  ;;  %v1506_v13 = vld [vmem:[#allocation4] sm:$0xff]  ;;  %v1518_v18 = vld [vmem:[#allocation8 + $0x160] sm:$0xff]  ;;  %v1527_v21 = vld [vmem:[#allocation8 + $0x148] sm:$0xff] }
  0x15   :  { %1207 = vset.pattern.permute.xlu2 %v125_v2  ;;  %384 = vmatpush.msra.mxu3 %v1479_v5  ;;  %2175 = vst [vmem:[#allocation11_spill] sm:$0xff] %v1506_v13  ;;  %v1508_v14 = vld [vmem:[#allocation8 + $0xf0] sm:$0xff]  ;;  %v123_v16 = vperm.slane %v1506_v13, 0  ;;  %v1513_v17 = vld [vmem:[#allocation8 + $0x178] sm:$0xff]  ;;  %v1522_v20 = vld [vmem:[#allocation8 + $0xe0] sm:$0xff]  ;;  %v130_v27 = vperm.slane %v1506_v13, 1 }
  0x16   :  { %270 = vmatpush.msra.mxu0 %v1485_v7  ;;  %290 = vmatpush.msra.mxu1 %v1487_v8  ;;  %v1520_v19 = vld [vmem:[#allocation8 + $0xd8] sm:$0xff]  ;;  %v1529_v22 = vld [vmem:[#allocation8 + $0xc0] sm:$0xff]  ;;  %v1531_v23 = vld [vmem:[#allocation8 + $0xc8] sm:$0xff]  ;;  %v165_v40 = vperm.slane %v1506_v13, 6 }
  0x17   :  { %385 = vmatpush.msra.mxu3 %v1485_v7  ;;  %308 = vmatpush.msra.mxu2 %v1513_v17  ;;  %v1537_v24 = vld [vmem:[#allocation8 + $0x130] sm:$0xff]  ;;  %v1539_v25 = vld [vmem:[#allocation8 + $0xa8] sm:$0xff]  ;;  %v1550_v29 = vld [vmem:[#allocation8 + $0x118] sm:$0xff] }
  0x18   :  { %271 = vmatpush.msra.mxu0 %v1492_v9  ;;  %291 = vmatpush.msra.mxu1 %v1494_v10  ;;  %v1541_v26 = vld [vmem:[#allocation8 + $0xb0] sm:$0xff]  ;;  %v1552_v30 = vld [vmem:[#allocation8 + $0x98] sm:$0xff]  ;;  %v1558_v31 = vld [vmem:[#allocation8 + $0x100] sm:$0xff] }
  0x19   :  { %386 = vmatpush.msra.mxu3 %v1492_v9  ;;  %309 = vmatpush.msra.mxu2 %v1518_v18  ;;  %v1548_v28 = vld [vmem:[#allocation8 + $0x90] sm:$0xff]  ;;  %v1560_v32 = vld [vmem:[#allocation8 + $0x78] sm:$0xff]  ;;  %v1562_v33 = vld [vmem:[#allocation8 + $0x80] sm:$0xff] }
  0x1a   :  { %272 = vmatpush.msra.mxu0 %v1499_v11  ;;  %292 = vmatpush.msra.mxu1 %v1501_v12  ;;  %v1567_v34 = vld [vmem:[#allocation8 + $0xe8] sm:$0xff]  ;;  %v1569_v35 = vld [vmem:[#allocation8 + $0x60] sm:$0xff]  ;;  %v1577_v37 = vld [vmem:[#allocation8 + $0xd0] sm:$0xff] }
  0x1b   :  { %387 = vmatpush.msra.mxu3 %v1499_v11  ;;  %310 = vmatpush.msra.mxu2 %v1527_v21  ;;  %v1571_v36 = vld [vmem:[#allocation8 + $0x68] sm:$0xff]  ;;  %v1581_v39 = vld [vmem:[#allocation8 + $0x50] sm:$0xff]  ;;  %v1588_v41 = vld [vmem:[#allocation8 + $0xb8] sm:$0xff] }
  0x1c   :  { %128 = vperm.xlu0 %1205, %v123_v16   ;;  %273 = vmatpush.msra.mxu0 %v1508_v14  ;;  %v1579_v38 = vld [vmem:[#allocation8 + $0x48] sm:$0xff]  ;;  %2176 = vst [vmem:[#allocation12_spill] sm:$0xff] %v1581_v39  ;;  %v1590_v42 = vld [vmem:[#allocation8 + $0x30] sm:$0xff]  ;;  %v1592_v43 = vld [vmem:[#allocation8 + $0x38] sm:$0xff] }
  0x1d   :  { %293 = vmatpush.msra.mxu1 %v1510_v15  ;;  %388 = vmatpush.msra.mxu3 %v1508_v14  ;;  %2177 = vst [vmem:[#allocation13_spill] sm:$0xff] %v1590_v42  ;;  %v1598_v44 = vld [vmem:[#allocation8 + $0xa0] sm:$0xff]  ;;  %v1600_v45 = vld [vmem:[#allocation8 + $0x18] sm:$0xff]  ;;  %v1607_v47 = vld [vmem:[#allocation8 + $0x88] sm:$0xff] }
  0x1e   :  { %274 = vmatpush.msra.mxu0 %v1520_v19  ;;  %311 = vmatpush.msra.mxu2 %v1537_v24  ;;  %2178 = vst [vmem:[#allocation14_spill] sm:$0xff] %v1592_v43  ;;  %v1602_v46 = vld [vmem:[#allocation8 + $0x20] sm:$0xff]  ;;  %v1611_v49 = vld [vmem:[#allocation8 + $0x8] sm:$0xff]  ;;  %v1618_v50 = vld [vmem:[#allocation8 + $0x70] sm:$0xff] }
  0x1f   :  { %294 = vmatpush.msra.mxu1 %v1522_v20  ;;  %389 = vmatpush.msra.mxu3 %v1520_v19  ;;  %2179 = vst [vmem:[#allocation15_spill] sm:$0xff] %v1600_v45  ;;  %v1609_v48 = vld [vmem:[#allocation8] sm:$0xff]  ;;  %v1623_v52 = vld [vmem:[#allocation8 + $0x58] sm:$0xff]  ;;  %v1633_v54 = vld [vmem:[#allocation8 + $0x28] sm:$0xff] }
  0x20   :  { %275 = vmatpush.msra.mxu0 %v1529_v22  ;;  %312 = vmatpush.msra.mxu2 %v1550_v29  ;;  %2180 = vst [vmem:[#allocation16_spill] sm:$0xff] %v1602_v46  ;;  %v1627_v53 = vld [vmem:[#allocation8 + $0x40] sm:$0xff]  ;;  %v1639_v55 = vld [vmem:[#allocation8 + $0x10] sm:$0xff]  ;;  %v71_v56 = vld [vmem:[#allocation6] sm:$0x7] }
  0x21   :  { %295 = vmatpush.msra.mxu1 %v1531_v23  ;;  %390 = vmatpush.msra.mxu3 %v1529_v22  ;;  %2181 = vst [vmem:[#allocation17_spill] sm:$0xff] %v1609_v48  ;;  %v1752_v57 = vperm.slane %v71_v56, 0  ;;  %v1754_v58 = vperm.slane %v71_v56, 1  ;;  %v72_v59 = vld [vmem:[%s2140_s3] sm:$0x7] }
  0x22   :  { %276 = vmatpush.msra.mxu0 %v1539_v25  ;;  %313 = vmatpush.msra.mxu2 %v1558_v31  ;;  %2182 = vst [vmem:[#allocation18_spill] sm:$0xff] %v1611_v49  ;;  %v1761_v63 = vperm.slane %v72_v59, 0  ;;  %v1763_v0 = vperm.slane %v72_v59, 1 }
  0x23   :  { %296 = vmatpush.msra.mxu1 %v1541_v26  ;;  %391 = vmatpush.msra.mxu3 %v1539_v25  ;;  %2183 = vst [vmem:[#allocation19_spill] sm:$0xff] %v1627_v53 }
  0x24   :  { %135 = vperm.xlu0 %1205, %v130_v27   ;;  %277 = vmatpush.msra.mxu0 %v1548_v28  ;;  %2184 = vst [vmem:[#allocation20_spill] sm:$0xff] %v1633_v54 }
  0x25   :  { %297 = vmatpush.msra.mxu1 %v1552_v30  ;;  %314 = vmatpush.msra.mxu2 %v1567_v34  ;;  %2185 = vst [vmem:[#allocation21_spill] sm:$0xff] %v1639_v55 }
  0x26   :  { %278 = vmatpush.msra.mxu0 %v1560_v32  ;;  %392 = vmatpush.msra.mxu3 %v1548_v28  ;;  %2186 = vst [vmem:[#allocation22_spill] sm:$0xff] %v1752_v57 }
  0x27   :  { %298 = vmatpush.msra.mxu1 %v1562_v33  ;;  %315 = vmatpush.msra.mxu2 %v1577_v37  ;;  %2187 = vst [vmem:[#allocation23_spill] sm:$0xff] %v1754_v58 }
  0x28   :  { %279 = vmatpush.msra.mxu0 %v1569_v35  ;;  %393 = vmatpush.msra.mxu3 %v1560_v32  ;;  %2188 = vst [vmem:[#allocation24_spill] sm:$0xff] %v1761_v63 }
  0x29   :  { %299 = vmatpush.msra.mxu1 %v1571_v36  ;;  %316 = vmatpush.msra.mxu2 %v1588_v41  ;;  %2189 = vst [vmem:[#allocation25_spill] sm:$0xff] %v1763_v0 }
  0x2a   :  { %280 = vmatpush.msra.mxu0 %v1579_v38  ;;  %394 = vmatpush.msra.mxu3 %v1569_v35 }
  0x2b   :  { %300 = vmatpush.msra.mxu1 %v1581_v39  ;;  %317 = vmatpush.msra.mxu2 %v1598_v44 }
  0x2c   :  { %170 = vperm.xlu0 %1205, %v165_v40   ;;  %281 = vmatpush.msra.mxu0 %v1590_v42 }
  0x2d   :  { %301 = vmatpush.msra.mxu1 %v1592_v43  ;;  %318 = vmatpush.msra.mxu2 %v1607_v47 }
  0x2e   :  { %282 = vmatpush.msra.mxu0 %v1600_v45  ;;  %395 = vmatpush.msra.mxu3 %v1579_v38 }
  0x2f   :  { %302 = vmatpush.msra.mxu1 %v1602_v46  ;;  %319 = vmatpush.msra.mxu2 %v1618_v50 }
  0x30   :  { %283 = vmatpush.msra.mxu0 %v1609_v48  ;;  %396 = vmatpush.msra.mxu3 %v1590_v42 }
  0x31   :  { %303 = vmatpush.msra.mxu1 %v1611_v49  ;;  %284 = vmatmul.f32.vlgmr.msra.gmra.mxu0 %v1422_v51 }
  0x32   :  { %304 = vmatmul.f32.vlgmr.msra.gmra.mxu1 %v1422_v51  ;;  %403 = vmatpush.msrb.mxu0 %v1477_v4 }
  0x33   :  { %423 = vmatpush.msrb.mxu1 %v1513_v17  ;;  %320 = vmatpush.msra.mxu2 %v1623_v52 }
  0x34   :  { %404 = vmatpush.msrb.mxu0 %v1483_v6  ;;  %397 = vmatpush.msra.mxu3 %v1600_v45 }
  0x35   :  { %424 = vmatpush.msrb.mxu1 %v1518_v18  ;;  %321 = vmatpush.msra.mxu2 %v1627_v53 }
  0x36   :  { %405 = vmatpush.msrb.mxu0 %v1487_v8  ;;  %398 = vmatpush.msra.mxu3 %v1609_v48 }
  0x37   :  { %425 = vmatpush.msrb.mxu1 %v1527_v21  ;;  %322 = vmatpush.msra.mxu2 %v1633_v54 }
  0x38   :  { %406 = vmatpush.msrb.mxu0 %v1494_v10  ;;  %515 = vmatpush.msrb.mxu3 %v1477_v4 }
  0x39   :  { %426 = vmatpush.msrb.mxu1 %v1537_v24  ;;  %323 = vmatpush.msra.mxu2 %v1639_v55 }
  0x3a   :  { %407 = vmatpush.msrb.mxu0 %v1501_v12  ;;  %324 = vmatmul.f32.vlgmr.msra.gmra.mxu2 %v1422_v51 }
  0x3b   :  { %427 = vmatpush.msrb.mxu1 %v1550_v29  ;;  %495 = vmatpush.msrb.mxu2 %v1475_v3 }
  0x3c   :  { %408 = vmatpush.msrb.mxu0 %v1510_v15  ;;  %516 = vmatpush.msrb.mxu3 %v1483_v6 }
  0x3d   :  { %428 = vmatpush.msrb.mxu1 %v1558_v31  ;;  %496 = vmatpush.msrb.mxu2 %v1479_v5 }
  0x3e   :  { %409 = vmatpush.msrb.mxu0 %v1522_v20  ;;  %517 = vmatpush.msrb.mxu3 %v1487_v8 }
  0x3f   :  { %429 = vmatpush.msrb.mxu1 %v1567_v34  ;;  %497 = vmatpush.msrb.mxu2 %v1485_v7 }
  0x40   :  { %410 = vmatpush.msrb.mxu0 %v1531_v23  ;;  %518 = vmatpush.msrb.mxu3 %v1494_v10 }
  0x41   :  { %430 = vmatpush.msrb.mxu1 %v1577_v37  ;;  %498 = vmatpush.msrb.mxu2 %v1492_v9 }
  0x42   :  { %411 = vmatpush.msrb.mxu0 %v1541_v26  ;;  %519 = vmatpush.msrb.mxu3 %v1501_v12 }
  0x43   :  { %431 = vmatpush.msrb.mxu1 %v1588_v41  ;;  %499 = vmatpush.msrb.mxu2 %v1499_v11 }
  0x44   :  { %412 = vmatpush.msrb.mxu0 %v1552_v30  ;;  %520 = vmatpush.msrb.mxu3 %v1510_v15 }
  0x45   :  { %432 = vmatpush.msrb.mxu1 %v1598_v44  ;;  %500 = vmatpush.msrb.mxu2 %v1508_v14 }
  0x46   :  { %413 = vmatpush.msrb.mxu0 %v1562_v33  ;;  %521 = vmatpush.msrb.mxu3 %v1522_v20 }
  0x47   :  { %433 = vmatpush.msrb.mxu1 %v1607_v47  ;;  %501 = vmatpush.msrb.mxu2 %v1520_v19 }
  0x48   :  { %414 = vmatpush.msrb.mxu0 %v1571_v36  ;;  %522 = vmatpush.msrb.mxu3 %v1531_v23 }
  0x49   :  { %434 = vmatpush.msrb.mxu1 %v1618_v50  ;;  %502 = vmatpush.msrb.mxu2 %v1529_v22 }
  0x4a   :  { %415 = vmatpush.msrb.mxu0 %v1581_v39  ;;  %523 = vmatpush.msrb.mxu3 %v1541_v26 }
  0x4b   :  { %435 = vmatpush.msrb.mxu1 %v1623_v52  ;;  %503 = vmatpush.msrb.mxu2 %v1539_v25 }
  0x4c   :  { %416 = vmatpush.msrb.mxu0 %v1592_v43  ;;  %524 = vmatpush.msrb.mxu3 %v1552_v30 }
  0x4d   :  { %436 = vmatpush.msrb.mxu1 %v1627_v53  ;;  %504 = vmatpush.msrb.mxu2 %v1548_v28 }
  0x4e   :  { %417 = vmatpush.msrb.mxu0 %v1602_v46  ;;  %525 = vmatpush.msrb.mxu3 %v1562_v33 }
  0x4f   :  { %437 = vmatpush.msrb.mxu1 %v1633_v54  ;;  %505 = vmatpush.msrb.mxu2 %v1560_v32 }
  0x50   :  { %418 = vmatpush.msrb.mxu0 %v1611_v49  ;;  %526 = vmatpush.msrb.mxu3 %v1571_v36 }
  0x51   :  { %438 = vmatpush.msrb.mxu1 %v1639_v55  ;;  %506 = vmatpush.msrb.mxu2 %v1569_v35 }
  0x52   :  { %535 = vmatpush.msra.mxu0 %v1513_v17  ;;  %527 = vmatpush.msrb.mxu3 %v1581_v39 }
  0x53   :  { %607 = vmatpush.msra.mxu1 %v1475_v3  ;;  %507 = vmatpush.msrb.mxu2 %v1579_v38 }
  0x54   :  { %536 = vmatpush.msra.mxu0 %v1518_v18  ;;  %528 = vmatpush.msrb.mxu3 %v1592_v43 }
  0x55   :  { %608 = vmatpush.msra.mxu1 %v1479_v5  ;;  %508 = vmatpush.msrb.mxu2 %v1590_v42 }
  0x56   :  { %537 = vmatpush.msra.mxu0 %v1527_v21  ;;  %529 = vmatpush.msrb.mxu3 %v1602_v46 }
  0x57   :  { %609 = vmatpush.msra.mxu1 %v1485_v7  ;;  %509 = vmatpush.msrb.mxu2 %v1600_v45 }
  0x58   :  { %538 = vmatpush.msra.mxu0 %v1537_v24  ;;  %530 = vmatpush.msrb.mxu3 %v1611_v49 }
  0x59   :  { %610 = vmatpush.msra.mxu1 %v1492_v9  ;;  %510 = vmatpush.msrb.mxu2 %v1609_v48 }
  0x5a   :  { %539 = vmatpush.msra.mxu0 %v1550_v29 }
  0x5b   :  { %627 = vmatpush.msra.mxu2 %v1477_v4  ;;  %611 = vmatpush.msra.mxu1 %v1499_v11 }
  0x5c   :  { %540 = vmatpush.msra.mxu0 %v1558_v31 }
  0x5d   :  { %628 = vmatpush.msra.mxu2 %v1483_v6  ;;  %612 = vmatpush.msra.mxu1 %v1508_v14 }
  0x5e   :  { %541 = vmatpush.msra.mxu0 %v1567_v34 }
  0x5f   :  { %629 = vmatpush.msra.mxu2 %v1487_v8  ;;  %613 = vmatpush.msra.mxu1 %v1520_v19 }
  0x60   :  { %542 = vmatpush.msra.mxu0 %v1577_v37 }
  0x61   :  { %630 = vmatpush.msra.mxu2 %v1494_v10  ;;  %614 = vmatpush.msra.mxu1 %v1529_v22 }
  0x62   :  { %543 = vmatpush.msra.mxu0 %v1588_v41 }
  0x63   :  { %631 = vmatpush.msra.mxu2 %v1501_v12  ;;  %615 = vmatpush.msra.mxu1 %v1539_v25 }
  0x64   :  { %544 = vmatpush.msra.mxu0 %v1598_v44 }
  0x65   :  { %632 = vmatpush.msra.mxu2 %v1510_v15  ;;  %616 = vmatpush.msra.mxu1 %v1548_v28 }
  0x66   :  { %545 = vmatpush.msra.mxu0 %v1607_v47 }
  0x67   :  { %633 = vmatpush.msra.mxu2 %v1522_v20  ;;  %617 = vmatpush.msra.mxu1 %v1560_v32 }
  0x68   :  { %546 = vmatpush.msra.mxu0 %v1618_v50 }
  0x69   :  { %634 = vmatpush.msra.mxu2 %v1531_v23  ;;  %618 = vmatpush.msra.mxu1 %v1569_v35 }
  0x6a   :  { %547 = vmatpush.msra.mxu0 %v1623_v52 }
  0x6b   :  { %635 = vmatpush.msra.mxu2 %v1541_v26  ;;  %619 = vmatpush.msra.mxu1 %v1579_v38 }
  0x6c   :  { %548 = vmatpush.msra.mxu0 %v1627_v53 }
  0x6d   :  { %636 = vmatpush.msra.mxu2 %v1552_v30  ;;  %620 = vmatpush.msra.mxu1 %v1590_v42 }
  0x6e   :  { %549 = vmatpush.msra.mxu0 %v1633_v54 }
  0x6f   :  { %637 = vmatpush.msra.mxu2 %v1562_v33  ;;  %621 = vmatpush.msra.mxu1 %v1600_v45 }
  0x70   :  { %550 = vmatpush.msra.mxu0 %v1639_v55 }
  0x71   :  { %638 = vmatpush.msra.mxu2 %v1571_v36  ;;  %622 = vmatpush.msra.mxu1 %v1609_v48 }
  0x73   :  { %639 = vmatpush.msra.mxu2 %v1581_v39 }
  0x75   :  { %640 = vmatpush.msra.mxu2 %v1592_v43 }
  0x77   :  { %641 = vmatpush.msra.mxu2 %v1602_v46 }
  0x79   :  { %642 = vmatpush.msra.mxu2 %v1611_v49 }
  0x8e   :  { %v129_v60 = vpop.permute.xlu0 %128 }
  0x8f   :  { %v186_v61 = vmul.f32 %v1752_v57, %v129_v60  ;;  %v187_v62 = vmul.f32 %v1754_v58, %v129_v60 }
  0x91   :  { %v217_v1 = vadd.f32 %v1761_v63, %v186_v61  ;;  %v218_v2 = vadd.f32 %v1763_v0, %v187_v62  ;;  %v1767_v63 = vperm.slane %v71_v56, 2 }
  0xae   :  { %v285_v16 = vpop.f32.mrf.mxu0 }
  0xaf   :  { %v305_v27 = vpop.f32.mrf.mxu1  ;;  %v328_v40 = vadd.f32 %v285_v16, %v217_v1  ;;  %v1772_v1 = vld [vmem:[%s2141_s4] ss:$0 sm:$0xff] }
  0xb0   :  { %v348_v51 = vadd.f32 %v305_v27, %v218_v2 }
  0xb1   :  { %v1183_v13 = vmul.f32 -1.442695, %v328_v40  ;;  %v188_v40 = vmul.f32 %v1767_v63, %v129_v60 }
  0xb2   :  { %v1184_v49 = vmul.f32 -1.442695, %v348_v51 }
  0xb3   :  { %1211 = vpow2.f32 %v1183_v13 }
  0xb4   :  { %1213 = vpow2.f32 %v1184_v49 }
  0xb9   :  { %v1212_v48 = vpop.eup %1211 }
  0xba   :  { %v1214_v57 = vpop.eup %1213  ;;  %v332_v55 = vadd.f32 1.0, %v1212_v48 }
  0xbb   :  { %v352_v58 = vadd.f32 1.0, %v1214_v57  ;;  %v1774_v57 = vperm.slane %v72_v59, 2 }
  0xbc   :  { %1215 = vrcp.f32 %v332_v55  ;;  %v344_v2 = vand.u32 2147483648, %v332_v55  ;;  %v342_v48 = vand.u32 2147483647, %v332_v55  ;;  %vm338_vm1 = vweird.f32 %v332_v55 }
  0xbd   :  { %1217 = vrcp.f32 %v352_v58  ;;  %v325_v49 = vpop.f32.mrf.mxu2  ;;  %v364_v53 = vand.u32 2147483648, %v352_v58  ;;  %vm358_vm5 = vweird.f32 %v352_v58  ;;  %v362_v59 = vand.u32 2147483647, %v352_v58 }
  0xbe   :  { %v345_v56 = vor.u32 1.1754944e-38, %v344_v2  ;;  %vm343_vm3 = vcmp.eq.f32.partialorder %v342_v48, 8.507059e+37 }
  0xbf   :  { %vm363_vm7 = vcmp.eq.f32.partialorder %v362_v59, 8.507059e+37  ;;  %v2200_v59 = vld [vmem:[#allocation25_spill] sm:$0xff] }
  0xc2   :  { %v1216_v46 = vpop.eup %1215 }
  0xc3   :  { %v1218_v45 = vpop.eup %1217  ;;  %v334_v54 = vmul.f32 %v1216_v46, %v332_v55  ;;  %vm339_vm0 = vweird.f32 %v1216_v46  ;;  %v365_v55 = vor.u32 1.1754944e-38, %v364_v53  ;;  %v2193_v53 = vld [vmem:[#allocation20_spill] sm:$0xff] }
  0xc4   :  { %v354_v61 = vmul.f32 %v1218_v45, %v352_v58  ;;  %vm340_vm2 = vmor %vm338_vm1, %vm339_vm0  ;;  %vm359_vm4 = vweird.f32 %v1218_v45  ;;  %v2194_v58 = vld [vmem:[#allocation15_spill] sm:$0xff] }
  0xc5   :  { %v335_v62 = vsub.f32 1.0, %v334_v54  ;;  %v371_v54 = vadd.f32 %v1772_v1, %v325_v49  ;;  %vm360_vm6 = vmor %vm358_vm5, %vm359_vm4 }
  0xc6   :  { %v355_v13 = vsub.f32 1.0, %v354_v61 }
  0xc7   :  { %v336_v16 = vmul.f32 %v1216_v46, %v335_v62  ;;  %v219_v62 = vadd.f32 %v1774_v57, %v188_v40  ;;  %v2196_v40 = vld [vmem:[#allocation21_spill] sm:$0xff] }
  0xc8   :  { %v356_v27 = vmul.f32 %v1218_v45, %v355_v13 }
  0xc9   :  { %v337_v51 = vadd.f32 %v1216_v46, %v336_v16 }
  0xca   :  { %v357_v61 = vadd.f32 %v1218_v45, %v356_v27  ;;  %v2195_v27 = vld [vmem:[#allocation16_spill] sm:$0xff] }
  0xcb   :  { %v341_v0 = vsel %vm340_vm2, %v1216_v46, %v337_v51  ;;  %v2197_v51 = vld [vmem:[#allocation17_spill] sm:$0xff] }
  0xcc   :  { %v346_v43 = vsel %vm343_vm3, %v345_v56, %v341_v0  ;;  %v361_v60 = vsel %vm360_vm6, %v1218_v45, %v357_v61  ;;  %v2192_v45 = vld [vmem:[#allocation14_spill] sm:$0xff]  ;;  %v136_v56 = vpop.permute.xlu0 %135  ;;  %v2199_v61 = vld [vmem:[#allocation23_spill] sm:$0xff] }
  0xcd   :  { %v372_v42 = vmul.f32 %v371_v54, %v346_v43  ;;  %v366_v49 = vsel %vm363_vm7, %v365_v55, %v361_v60  ;;  %v2191_v43 = vld [vmem:[#allocation13_spill] sm:$0xff]  ;;  %v2198_v54 = vld [vmem:[#allocation18_spill] sm:$0xff] }
  0xce   :  { %v375_v16 = vsub.f32 1.0, %v366_v49  ;;  %v377_v48 = vmul.f32 0.0, %v366_v49  ;;  %v2201_v55 = vld [vmem:[#allocation22_spill] sm:$0xff] }
  0xcf   :  { %v373_v13 = vadd.f32 %v372_v42, %v219_v62  ;;  %v2190_v42 = vld [vmem:[#allocation19_spill] sm:$0xff]  ;;  %v190_v62 = vmul.f32 %v2199_v61, %v136_v56  ;;  %v189_v49 = vmul.f32 %v2201_v55, %v136_v56 }
  0xd1   :  { %1219 = vtanh.f32 %v373_v13  ;;  %v221_v13 = vadd.f32 %v2200_v59, %v190_v62 }
  0xd7   :  { %v1220_v2 = vpop.eup %1219 }
  0xd8   :  { %v376_v46 = vmul.f32 %v1220_v2, %v375_v16 }
  0xda   :  { %v1779_v0 = vadd.f32 %v377_v48, %v376_v46  ;;  %v2202_v46 = vld [vmem:[#allocation11_spill] sm:$0xff] }
  0xdb   :  { %v137_v48 = vperm.slane %v2202_v46, 2 }
  0xdc   :  { %399 = vmatmul.f32.vlgmr.msra.gmra.mxu3 %v1779_v0  ;;  %419 = vmatmul.f32.vlgmr.msrb.gmra.mxu0 %v1779_v0 }
  0xdd   :  { %439 = vmatmul.f32.vlgmr.msrb.gmra.mxu1 %v1779_v0  ;;  %647 = vmatpush.msra.mxu3 %v1513_v17 }
  0xde   :  { %719 = vmatpush.msrb.mxu0 %v1475_v3  ;;  %739 = vmatpush.msrb.mxu1 %v1477_v4 }
  0xdf   :  { %648 = vmatpush.msra.mxu3 %v1518_v18  ;;  %142 = vperm.xlu1 %1206, %v137_v48  }
  0xe0   :  { %720 = vmatpush.msrb.mxu0 %v1479_v5  ;;  %740 = vmatpush.msrb.mxu1 %v1483_v6 }
  0xe1   :  { %649 = vmatpush.msra.mxu3 %v1527_v21 }
  0xe2   :  { %721 = vmatpush.msrb.mxu0 %v1485_v7  ;;  %741 = vmatpush.msrb.mxu1 %v1487_v8 }
  0xe3   :  { %650 = vmatpush.msra.mxu3 %v1537_v24 }
  0xe4   :  { %722 = vmatpush.msrb.mxu0 %v1492_v9  ;;  %742 = vmatpush.msrb.mxu1 %v1494_v10 }
  0xe5   :  { %651 = vmatpush.msra.mxu3 %v1550_v29 }
  0xe6   :  { %723 = vmatpush.msrb.mxu0 %v1499_v11  ;;  %743 = vmatpush.msrb.mxu1 %v1501_v12 }
  0xe7   :  { %652 = vmatpush.msra.mxu3 %v1558_v31 }
  0xe8   :  { %724 = vmatpush.msrb.mxu0 %v1508_v14  ;;  %744 = vmatpush.msrb.mxu1 %v1510_v15 }
  0xe9   :  { %653 = vmatpush.msra.mxu3 %v1567_v34 }
  0xea   :  { %725 = vmatpush.msrb.mxu0 %v1520_v19  ;;  %745 = vmatpush.msrb.mxu1 %v1522_v20 }
  0xeb   :  { %654 = vmatpush.msra.mxu3 %v1577_v37 }
  0xec   :  { %726 = vmatpush.msrb.mxu0 %v1529_v22  ;;  %746 = vmatpush.msrb.mxu1 %v1531_v23 }
  0xed   :  { %655 = vmatpush.msra.mxu3 %v1588_v41 }
  0xee   :  { %727 = vmatpush.msrb.mxu0 %v1539_v25  ;;  %747 = vmatpush.msrb.mxu1 %v1541_v26 }
  0xef   :  { %656 = vmatpush.msra.mxu3 %v1598_v44 }
  0xf0   :  { %728 = vmatpush.msrb.mxu0 %v1548_v28  ;;  %748 = vmatpush.msrb.mxu1 %v1552_v30 }
  0xf1   :  { %657 = vmatpush.msra.mxu3 %v1607_v47 }
  0xf2   :  { %729 = vmatpush.msrb.mxu0 %v1560_v32  ;;  %749 = vmatpush.msrb.mxu1 %v1562_v33 }
  0xf3   :  { %658 = vmatpush.msra.mxu3 %v1618_v50 }
  0xf4   :  { %730 = vmatpush.msrb.mxu0 %v1569_v35  ;;  %750 = vmatpush.msrb.mxu1 %v1571_v36 }
  0xf5   :  { %659 = vmatpush.msra.mxu3 %v1623_v52 }
  0xf6   :  { %731 = vmatpush.msrb.mxu0 %v1579_v38  ;;  %751 = vmatpush.msrb.mxu1 %v1581_v39 }
  0xf7   :  { %660 = vmatpush.msra.mxu3 %v2190_v42 }
  0xf8   :  { %732 = vmatpush.msrb.mxu0 %v2191_v43  ;;  %752 = vmatpush.msrb.mxu1 %v2192_v45 }
  0xf9   :  { %661 = vmatpush.msra.mxu3 %v2193_v53 }
  0xfa   :  { %733 = vmatpush.msrb.mxu0 %v2194_v58  ;;  %753 = vmatpush.msrb.mxu1 %v2195_v27  ;;  %v2203_v27 = vld [vmem:[#allocation24_spill] sm:$0xff] }
  0xfb   :  { %662 = vmatpush.msra.mxu3 %v2196_v40  ;;  %v220_v58 = vadd.f32 %v2203_v27, %v189_v49  ;;  %v172_v49 = vperm.slane %v2202_v46, 7 }
  0xfc   :  { %734 = vmatpush.msrb.mxu0 %v2197_v51  ;;  %754 = vmatpush.msrb.mxu1 %v2198_v54 }
 0x159   :  { %v420_v60 = vpop.f32.mrf.mxu0 }
 0x15a   :  { %v463_v16 = vadd.f32 %v420_v60, %v221_v13  ;;  %v144_v13 = vperm.slane %v2202_v46, 3 }
 0x15c   :  { %v1186_v2 = vmul.f32 -1.442695, %v463_v16  ;;  %149 = vperm.xlu1 %1206, %v144_v13  }
 0x15e   :  { %1221 = vpow2.f32 %v1186_v2 }
 0x15f   :  { %v400_v40 = vpop.f32.mrf.mxu3 }
 0x160   :  { %v443_v51 = vadd.f32 %v400_v40, %v220_v58 }
 0x162   :  { %v1185_v53 = vmul.f32 -1.442695, %v443_v51 }
 0x164   :  { %v1222_v54 = vpop.eup %1221  ;;  %1223 = vpow2.f32 %v1185_v53  ;;  %177 = vperm.xlu1 %1206, %v172_v49  }
 0x165   :  { %v467_v45 = vadd.f32 1.0, %v1222_v54  ;;  %v440_v54 = vpop.f32.mrf.mxu1 }
 0x166   :  { %v483_v43 = vadd.f32 %v1772_v1, %v440_v54 }
 0x167   :  { %1225 = vrcp.f32 %v467_v45  ;;  %vm473_vm13 = vweird.f32 %v467_v45 }
 0x16a   :  { %v1224_v61 = vpop.eup %1223 }
 0x16b   :  { %v447_v62 = vadd.f32 1.0, %v1224_v61  ;;  %v191_v61 = vmul.f32 %v1767_v63, %v136_v56 }
 0x16d   :  { %1227 = vrcp.f32 %v447_v62  ;;  %v1226_v59 = vpop.eup %1225  ;;  %v459_v58 = vand.u32 2147483648, %v447_v62  ;;  %v457_v53 = vand.u32 2147483647, %v447_v62  ;;  %vm453_vm9 = vweird.f32 %v447_v62 }
 0x16e   :  { %v469_v60 = vmul.f32 %v1226_v59, %v467_v45  ;;  %vm474_vm12 = vweird.f32 %v1226_v59 }
 0x16f   :  { %v460_v13 = vor.u32 1.1754944e-38, %v459_v58  ;;  %vm458_vm11 = vcmp.eq.f32.partialorder %v457_v53, 8.507059e+37  ;;  %vm475_vm14 = vmor %vm473_vm13, %vm474_vm12 }
 0x170   :  { %v470_v27 = vsub.f32 1.0, %v469_v60 }
 0x172   :  { %v471_v51 = vmul.f32 %v1226_v59, %v470_v27  ;;  %v477_v27 = vand.u32 2147483647, %v467_v45 }
 0x173   :  { %v1228_v16 = vpop.eup %1227 }
 0x174   :  { %v449_v2 = vmul.f32 %v1228_v16, %v447_v62  ;;  %vm454_vm8 = vweird.f32 %v1228_v16  ;;  %v472_v60 = vadd.f32 %v1226_v59, %v471_v51  ;;  %vm478_vm15 = vcmp.eq.f32.partialorder %v477_v27, 8.507059e+37 }
 0x175   :  { %vm455_vm10 = vmor %vm453_vm9, %vm454_vm8 }
 0x176   :  { %v450_v48 = vsub.f32 1.0, %v449_v2  ;;  %v222_v2 = vadd.f32 %v1774_v57, %v191_v61  ;;  %v476_v56 = vsel %vm475_vm14, %v1226_v59, %v472_v60 }
 0x178   :  { %v451_v40 = vmul.f32 %v1228_v16, %v450_v48  ;;  %v479_v48 = vand.u32 2147483648, %v467_v45 }
 0x17a   :  { %v452_v55 = vadd.f32 %v1228_v16, %v451_v40  ;;  %v480_v40 = vor.u32 1.1754944e-38, %v479_v48 }
 0x17c   :  { %v456_v42 = vsel %vm455_vm10, %v1228_v16, %v452_v55  ;;  %v481_v62 = vsel %vm478_vm15, %v480_v40, %v476_v56 }
 0x17d   :  { %v461_v46 = vsel %vm458_vm11, %v460_v13, %v456_v42  ;;  %v487_v58 = vsub.f32 1.0, %v481_v62  ;;  %v489_v42 = vmul.f32 %v481_v62, %v1779_v0 }
 0x17e   :  { %v484_v39 = vmul.f32 %v483_v43, %v461_v46 }
 0x180   :  { %v485_v49 = vadd.f32 %v484_v39, %v222_v2 }
 0x182   :  { %1229 = vtanh.f32 %v485_v49 }
 0x188   :  { %v1230_v54 = vpop.eup %1229 }
 0x189   :  { %v488_v55 = vmul.f32 %v1230_v54, %v487_v58 }
 0x18b   :  { %v1843_v16 = vadd.f32 %v489_v42, %v488_v55 }
 0x18d   :  { %511 = vmatmul.f32.vlgmr.msrb.gmra.mxu2 %v1843_v16  ;;  %531 = vmatmul.f32.vlgmr.msrb.gmra.mxu3 %v1843_v16 }
 0x18e   :  { %551 = vmatmul.f32.vlgmr.msra.gmra.mxu0 %v1843_v16  ;;  %759 = vmatpush.msrb.mxu2 %v1513_v17 }
 0x18f   :  { %831 = vmatpush.msrb.mxu3 %v1475_v3  ;;  %851 = vmatpush.msra.mxu0 %v1477_v4  ;;  %v2204_v3 = vld [vmem:[#allocation12_spill] sm:$0xff]  ;;  %v2205_v4 = vld [vmem:[#allocation19_spill] sm:$0xff] }
 0x190   :  { %760 = vmatpush.msrb.mxu2 %v1518_v18 }
 0x191   :  { %832 = vmatpush.msrb.mxu3 %v1479_v5  ;;  %852 = vmatpush.msra.mxu0 %v1483_v6  ;;  %v2206_v5 = vld [vmem:[#allocation13_spill] sm:$0xff]  ;;  %v2207_v6 = vld [vmem:[#allocation14_spill] sm:$0xff] }
 0x192   :  { %761 = vmatpush.msrb.mxu2 %v1527_v21 }
 0x193   :  { %833 = vmatpush.msrb.mxu3 %v1485_v7  ;;  %853 = vmatpush.msra.mxu0 %v1487_v8  ;;  %v2208_v7 = vld [vmem:[#allocation20_spill] sm:$0xff]  ;;  %v2209_v8 = vld [vmem:[#allocation15_spill] sm:$0xff] }
 0x194   :  { %762 = vmatpush.msrb.mxu2 %v1537_v24 }
 0x195   :  { %834 = vmatpush.msrb.mxu3 %v1492_v9  ;;  %854 = vmatpush.msra.mxu0 %v1494_v10  ;;  %v2210_v9 = vld [vmem:[#allocation16_spill] sm:$0xff]  ;;  %v2211_v10 = vld [vmem:[#allocation21_spill] sm:$0xff] }
 0x196   :  { %763 = vmatpush.msrb.mxu2 %v1550_v29 }
 0x197   :  { %835 = vmatpush.msrb.mxu3 %v1499_v11  ;;  %855 = vmatpush.msra.mxu0 %v1501_v12  ;;  %v2212_v11 = vld [vmem:[#allocation17_spill] sm:$0xff]  ;;  %v2213_v12 = vld [vmem:[#allocation18_spill] sm:$0xff] }
 0x198   :  { %764 = vmatpush.msrb.mxu2 %v1558_v31 }
 0x199   :  { %836 = vmatpush.msrb.mxu3 %v1508_v14  ;;  %856 = vmatpush.msra.mxu0 %v1510_v15  ;;  %v143_v14 = vpop.permute.xlu1 %142  ;;  %v2214_v15 = vld [vmem:[#allocation22_spill] sm:$0xff] }
 0x19a   :  { %765 = vmatpush.msrb.mxu2 %v1567_v34  ;;  %v194_v42 = vmul.f32 %v1767_v63, %v143_v14 }
 0x19b   :  { %837 = vmatpush.msrb.mxu3 %v1520_v19  ;;  %857 = vmatpush.msra.mxu0 %v1522_v20  ;;  %v192_v19 = vmul.f32 %v2214_v15, %v143_v14  ;;  %v2215_v20 = vld [vmem:[#allocation23_spill] sm:$0xff] }
 0x19c   :  { %766 = vmatpush.msrb.mxu2 %v1577_v37 }
 0x19d   :  { %838 = vmatpush.msrb.mxu3 %v1529_v22  ;;  %858 = vmatpush.msra.mxu0 %v1531_v23  ;;  %v193_v22 = vmul.f32 %v2215_v20, %v143_v14  ;;  %v2216_v23 = vld [vmem:[#allocation24_spill] sm:$0xff] }
 0x19e   :  { %767 = vmatpush.msrb.mxu2 %v1588_v41 }
 0x19f   :  { %839 = vmatpush.msrb.mxu3 %v1539_v25  ;;  %859 = vmatpush.msra.mxu0 %v1541_v26  ;;  %v223_v25 = vadd.f32 %v2216_v23, %v192_v19  ;;  %v2217_v26 = vld [vmem:[#allocation25_spill] sm:$0xff] }
 0x1a0   :  { %768 = vmatpush.msrb.mxu2 %v1598_v44 }
 0x1a1   :  { %840 = vmatpush.msrb.mxu3 %v1548_v28  ;;  %860 = vmatpush.msra.mxu0 %v1552_v30  ;;  %v224_v28 = vadd.f32 %v2217_v26, %v193_v22 }
 0x1a2   :  { %769 = vmatpush.msrb.mxu2 %v1607_v47 }
 0x1a3   :  { %841 = vmatpush.msrb.mxu3 %v1560_v32  ;;  %861 = vmatpush.msra.mxu0 %v1562_v33 }
 0x1a4   :  { %770 = vmatpush.msrb.mxu2 %v1618_v50 }
 0x1a5   :  { %842 = vmatpush.msrb.mxu3 %v1569_v35  ;;  %862 = vmatpush.msra.mxu0 %v1571_v36 }
 0x1a6   :  { %771 = vmatpush.msrb.mxu2 %v1623_v52 }
 0x1a7   :  { %843 = vmatpush.msrb.mxu3 %v1579_v38  ;;  %863 = vmatpush.msra.mxu0 %v2204_v3 }
 0x1a8   :  { %772 = vmatpush.msrb.mxu2 %v2205_v4 }
 0x1a9   :  { %844 = vmatpush.msrb.mxu3 %v2206_v5  ;;  %864 = vmatpush.msra.mxu0 %v2207_v6 }
 0x1aa   :  { %773 = vmatpush.msrb.mxu2 %v2208_v7 }
 0x1ab   :  { %845 = vmatpush.msrb.mxu3 %v2209_v8  ;;  %865 = vmatpush.msra.mxu0 %v2210_v9 }
 0x1ac   :  { %774 = vmatpush.msrb.mxu2 %v2211_v10 }
 0x1ad   :  { %846 = vmatpush.msrb.mxu3 %v2212_v11  ;;  %866 = vmatpush.msra.mxu0 %v2213_v12 }
 0x20b   :  { %v552_v54 = vpop.f32.mrf.mxu0 }
 0x210   :  { %v512_v39 = vpop.f32.mrf.mxu2  ;;  %v532_v0 = vpop.f32.mrf.mxu3 }
 0x211   :  { %v555_v43 = vadd.f32 %v512_v39, %v223_v25  ;;  %v575_v45 = vadd.f32 %v532_v0, %v224_v28  ;;  %v595_v25 = vadd.f32 %v1772_v1, %v552_v54  ;;  %v1941_v54 = vld [vmem:[#allocation8 + $0x110] sm:$0xff] }
 0x213   :  { %v1187_v59 = vmul.f32 -1.442695, %v555_v43  ;;  %v1188_v53 = vmul.f32 -1.442695, %v575_v45  ;;  %v225_v43 = vadd.f32 %v1774_v57, %v194_v42  ;;  %v1955_v42 = vld [vmem:[#allocation8 + $0xe0] sm:$0xff] }
 0x215   :  { %1231 = vpow2.f32 %v1187_v59 }
 0x216   :  { %1233 = vpow2.f32 %v1188_v53 }
 0x21b   :  { %v1232_v51 = vpop.eup %1231 }
 0x21c   :  { %v1234_v61 = vpop.eup %1233  ;;  %v559_v13 = vadd.f32 1.0, %v1232_v51 }
 0x21d   :  { %v579_v46 = vadd.f32 1.0, %v1234_v61 }
 0x21e   :  { %1235 = vrcp.f32 %v559_v13  ;;  %v571_v56 = vand.u32 2147483648, %v559_v13  ;;  %v569_v58 = vand.u32 2147483647, %v559_v13  ;;  %vm565_vm1 = vweird.f32 %v559_v13 }
 0x21f   :  { %1237 = vrcp.f32 %v579_v46  ;;  %v591_v45 = vand.u32 2147483648, %v579_v46  ;;  %vm585_vm5 = vweird.f32 %v579_v46  ;;  %v589_v53 = vand.u32 2147483647, %v579_v46 }
 0x220   :  { %v572_v22 = vor.u32 1.1754944e-38, %v571_v56  ;;  %vm570_vm3 = vcmp.eq.f32.partialorder %v569_v58, 8.507059e+37  ;;  %v1934_v58 = vld [vmem:[#allocation8 + $0x128] sm:$0xff] }
 0x221   :  { %v592_v61 = vor.u32 1.1754944e-38, %v591_v45  ;;  %vm590_vm7 = vcmp.eq.f32.partialorder %v589_v53, 8.507059e+37 }
 0x224   :  { %v1236_v60 = vpop.eup %1235 }
 0x225   :  { %v1238_v2 = vpop.eup %1237  ;;  %v561_v48 = vmul.f32 %v1236_v60, %v559_v13  ;;  %vm566_vm0 = vweird.f32 %v1236_v60 }
 0x226   :  { %v581_v27 = vmul.f32 %v1238_v2, %v579_v46  ;;  %vm567_vm2 = vmor %vm565_vm1, %vm566_vm0  ;;  %vm586_vm4 = vweird.f32 %v1238_v2  ;;  %v1910_v46 = vld [vmem:[#allocation8 + $0x168] sm:$0xff] }
 0x227   :  { %v562_v49 = vsub.f32 1.0, %v561_v48  ;;  %vm587_vm6 = vmor %vm585_vm5, %vm586_vm4 }
 0x228   :  { %v582_v40 = vsub.f32 1.0, %v581_v27 }
 0x229   :  { %v563_v62 = vmul.f32 %v1236_v60, %v562_v49 }
 0x22a   :  { %v583_v55 = vmul.f32 %v1238_v2, %v582_v40  ;;  %v1920_v40 = vld [vmem:[#allocation8 + $0x158] sm:$0xff] }
 0x22b   :  { %v564_v19 = vadd.f32 %v1236_v60, %v563_v62  ;;  %v1927_v62 = vld [vmem:[#allocation8 + $0x140] sm:$0xff] }
 0x22c   :  { %v584_v0 = vadd.f32 %v1238_v2, %v583_v55  ;;  %v1948_v55 = vld [vmem:[#allocation8 + $0xf8] sm:$0xff] }
 0x22d   :  { %v568_v28 = vsel %vm567_vm2, %v1236_v60, %v564_v19  ;;  %v1962_v19 = vld [vmem:[#allocation8 + $0xc8] sm:$0xff] }
 0x22e   :  { %v573_v39 = vsel %vm570_vm3, %v572_v22, %v568_v28  ;;  %v588_v14 = vsel %vm587_vm6, %v1238_v2, %v584_v0  ;;  %v1913_v2 = vld [vmem:[#allocation8 + $0x170] sm:$0xff] }
 0x22f   :  { %v596_v59 = vmul.f32 %v595_v25, %v573_v39  ;;  %v593_v13 = vsel %vm590_vm7, %v592_v61, %v588_v14  ;;  %v1969_v22 = vld [vmem:[#allocation8 + $0xb0] sm:$0xff] }
 0x230   :  { %v599_v48 = vsub.f32 1.0, %v593_v13  ;;  %v601_v49 = vmul.f32 %v593_v13, %v1843_v16  ;;  %v1917_v16 = vld [vmem:[#allocation8 + $0x150] sm:$0xff] }
 0x231   :  { %v597_v51 = vadd.f32 %v596_v59, %v225_v43 }
 0x233   :  { %1239 = vtanh.f32 %v597_v51 }
 0x239   :  { %v1240_v27 = vpop.eup %1239 }
 0x23a   :  { %v600_v60 = vmul.f32 %v1240_v27, %v599_v48 }
 0x23c   :  { %v1904_v56 = vadd.f32 %v601_v49, %v600_v60 }
 0x23e   :  { %623 = vmatmul.f32.vlgmr.msra.gmra.mxu1 %v1904_v56  ;;  %643 = vmatmul.f32.vlgmr.msra.gmra.mxu2 %v1904_v56 }
 0x23f   :  { %663 = vmatmul.f32.vlgmr.msra.gmra.mxu3 %v1904_v56  ;;  %871 = vmatpush.msra.mxu1 %v1513_v17  ;;  %v1924_v17 = vld [vmem:[#allocation8 + $0x138] sm:$0xff] }
 0x240   :  { %943 = vmatpush.msra.mxu2 %v1910_v46  ;;  %963 = vmatpush.msra.mxu3 %v1913_v2 }
 0x241   :  { %872 = vmatpush.msra.mxu1 %v1518_v18  ;;  %v1931_v18 = vld [vmem:[#allocation8 + $0x120] sm:$0xff] }
 0x242   :  { %944 = vmatpush.msra.mxu2 %v1917_v16  ;;  %964 = vmatpush.msra.mxu3 %v1920_v40 }
 0x243   :  { %873 = vmatpush.msra.mxu1 %v1527_v21  ;;  %v1938_v21 = vld [vmem:[#allocation8 + $0x108] sm:$0xff] }
 0x244   :  { %945 = vmatpush.msra.mxu2 %v1924_v17  ;;  %965 = vmatpush.msra.mxu3 %v1927_v62 }
 0x245   :  { %874 = vmatpush.msra.mxu1 %v1537_v24  ;;  %v1945_v24 = vld [vmem:[#allocation8 + $0xf0] sm:$0xff] }
 0x246   :  { %946 = vmatpush.msra.mxu2 %v1931_v18  ;;  %966 = vmatpush.msra.mxu3 %v1934_v58 }
 0x247   :  { %875 = vmatpush.msra.mxu1 %v1550_v29  ;;  %v1952_v29 = vld [vmem:[#allocation8 + $0xd8] sm:$0xff] }
 0x248   :  { %947 = vmatpush.msra.mxu2 %v1938_v21  ;;  %967 = vmatpush.msra.mxu3 %v1941_v54 }
 0x249   :  { %876 = vmatpush.msra.mxu1 %v1558_v31  ;;  %v1959_v31 = vld [vmem:[#allocation8 + $0xc0] sm:$0xff] }
 0x24a   :  { %948 = vmatpush.msra.mxu2 %v1945_v24  ;;  %968 = vmatpush.msra.mxu3 %v1948_v55 }
 0x24b   :  { %877 = vmatpush.msra.mxu1 %v1567_v34  ;;  %v1966_v34 = vld [vmem:[#allocation8 + $0xa8] sm:$0xff] }
 0x24c   :  { %949 = vmatpush.msra.mxu2 %v1952_v29  ;;  %969 = vmatpush.msra.mxu3 %v1955_v42 }
 0x24d   :  { %878 = vmatpush.msra.mxu1 %v1577_v37  ;;  %v1973_v37 = vld [vmem:[#allocation8 + $0x90] sm:$0xff] }
 0x24e   :  { %950 = vmatpush.msra.mxu2 %v1959_v31  ;;  %970 = vmatpush.msra.mxu3 %v1962_v19 }
 0x24f   :  { %879 = vmatpush.msra.mxu1 %v1588_v41 }
 0x250   :  { %951 = vmatpush.msra.mxu2 %v1966_v34  ;;  %971 = vmatpush.msra.mxu3 %v1969_v22 }
 0x251   :  { %880 = vmatpush.msra.mxu1 %v1598_v44 }
 0x252   :  { %952 = vmatpush.msra.mxu2 %v1973_v37  ;;  %972 = vmatpush.msra.mxu3 %v1552_v30  ;;  %v150_v30 = vpop.permute.xlu1 %149 }
 0x253   :  { %881 = vmatpush.msra.mxu1 %v1607_v47  ;;  %v197_v43 = vmul.f32 %v1767_v63, %v150_v30 }
 0x254   :  { %953 = vmatpush.msra.mxu2 %v1560_v32  ;;  %973 = vmatpush.msra.mxu3 %v1562_v33  ;;  %v195_v32 = vmul.f32 %v2214_v15, %v150_v30 }
 0x255   :  { %882 = vmatpush.msra.mxu1 %v1618_v50  ;;  %v228_v48 = vadd.f32 %v1774_v57, %v197_v43 }
 0x256   :  { %954 = vmatpush.msra.mxu2 %v1569_v35  ;;  %974 = vmatpush.msra.mxu3 %v1571_v36  ;;  %v226_v33 = vadd.f32 %v2216_v23, %v195_v32  ;;  %v196_v36 = vmul.f32 %v2215_v20, %v150_v30 }
 0x257   :  { %883 = vmatpush.msra.mxu1 %v1623_v52 }
 0x258   :  { %955 = vmatpush.msra.mxu2 %v1579_v38  ;;  %975 = vmatpush.msra.mxu3 %v2204_v3  ;;  %v227_v44 = vadd.f32 %v2217_v26, %v196_v36 }
 0x259   :  { %884 = vmatpush.msra.mxu1 %v2205_v4 }
 0x25a   :  { %956 = vmatpush.msra.mxu2 %v2206_v5  ;;  %976 = vmatpush.msra.mxu3 %v2207_v6  ;;  %v1310_v5 = vld [vmem:[#allocation4] sm:$0xff] }
 0x25b   :  { %885 = vmatpush.msra.mxu1 %v2208_v7  ;;  %v151_v6 = vperm.slane %v1310_v5, 4 }
 0x25c   :  { %957 = vmatpush.msra.mxu2 %v2209_v8  ;;  %977 = vmatpush.msra.mxu3 %v2210_v9 }
 0x25d   :  { %886 = vmatpush.msra.mxu1 %v2211_v10  ;;  %156 = vperm.xlu2 %1207, %v151_v6   ;;  %v2023_v6 = vld [vmem:[#allocation8 + $0x130] sm:$0xff] }
 0x25e   :  { %958 = vmatpush.msra.mxu2 %v2212_v11  ;;  %978 = vmatpush.msra.mxu3 %v2213_v12  ;;  %v158_v11 = vperm.slane %v1310_v5, 5  ;;  %v2013_v5 = vld [vmem:[#allocation8 + $0x160] sm:$0xff] }
 0x265   :  { %163 = vperm.xlu2 %1207, %v158_v11   ;;  %v1338_v11 = vld [vmem:[#allocation8] sm:$0xff] }
 0x2bb   :  { %v624_v35 = vpop.f32.mrf.mxu1 }
 0x2bc   :  { %v667_v38 = vadd.f32 %v624_v35, %v226_v33 }
 0x2be   :  { %v1189_v41 = vmul.f32 -1.442695, %v667_v38 }
 0x2c0   :  { %1241 = vpow2.f32 %v1189_v41 }
 0x2c1   :  { %v644_v47 = vpop.f32.mrf.mxu2 }
 0x2c2   :  { %v687_v50 = vadd.f32 %v644_v47, %v227_v44  ;;  %v664_v45 = vpop.f32.mrf.mxu3 }
 0x2c3   :  { %v707_v13 = vadd.f32 %v1772_v1, %v664_v45 }
 0x2c4   :  { %v1190_v52 = vmul.f32 -1.442695, %v687_v50 }
 0x2c6   :  { %v1242_v3 = vpop.eup %1241  ;;  %1243 = vpow2.f32 %v1190_v52 }
 0x2c7   :  { %v671_v4 = vadd.f32 1.0, %v1242_v3 }
 0x2c9   :  { %1245 = vrcp.f32 %v671_v4  ;;  %v683_v25 = vand.u32 2147483648, %v671_v4  ;;  %v681_v39 = vand.u32 2147483647, %v671_v4  ;;  %vm677_vm9 = vweird.f32 %v671_v4 }
 0x2cb   :  { %v684_v51 = vor.u32 1.1754944e-38, %v683_v25  ;;  %vm682_vm11 = vcmp.eq.f32.partialorder %v681_v39, 8.507059e+37  ;;  %v157_v25 = vpop.permute.xlu2 %156 }
 0x2cc   :  { %v1244_v7 = vpop.eup %1243  ;;  %v199_v39 = vmul.f32 %v2215_v20, %v157_v25 }
 0x2cd   :  { %v691_v8 = vadd.f32 1.0, %v1244_v7  ;;  %v2069_v7 = vld [vmem:[#allocation8 + $0x28] sm:$0xff] }
 0x2ce   :  { %v230_v43 = vadd.f32 %v2217_v26, %v199_v39 }
 0x2cf   :  { %v1246_v9 = vpop.eup %1245  ;;  %1247 = vrcp.f32 %v691_v8  ;;  %v703_v32 = vand.u32 2147483648, %v691_v8  ;;  %v701_v33 = vand.u32 2147483647, %v691_v8  ;;  %vm697_vm13 = vweird.f32 %v691_v8 }
 0x2d0   :  { %v673_v10 = vmul.f32 %v1246_v9, %v671_v4  ;;  %vm678_vm8 = vweird.f32 %v1246_v9  ;;  %v2008_v4 = vld [vmem:[#allocation8 + $0x178] sm:$0xff] }
 0x2d1   :  { %vm679_vm10 = vmor %vm677_vm9, %vm678_vm8  ;;  %v704_v38 = vor.u32 1.1754944e-38, %v703_v32  ;;  %vm702_vm15 = vcmp.eq.f32.partialorder %v701_v33, 8.507059e+37 }
 0x2d2   :  { %v674_v12 = vsub.f32 1.0, %v673_v10  ;;  %v2072_v10 = vld [vmem:[#allocation8 + $0x10] sm:$0xff] }
 0x2d4   :  { %v675_v28 = vmul.f32 %v1246_v9, %v674_v12  ;;  %v1339_v12 = vld [vmem:[#allocation8 + $0x8] sm:$0xff] }
 0x2d5   :  { %v1248_v0 = vpop.eup %1247 }
 0x2d6   :  { %v693_v59 = vmul.f32 %v1248_v0, %v691_v8  ;;  %v676_v53 = vadd.f32 %v1246_v9, %v675_v28  ;;  %vm698_vm12 = vweird.f32 %v1248_v0  ;;  %v1335_v8 = vld [vmem:[#allocation8 + $0x18] sm:$0xff]  ;;  %v198_v28 = vmul.f32 %v2214_v15, %v157_v25 }
 0x2d7   :  { %vm699_vm14 = vmor %vm697_vm13, %vm698_vm12 }
 0x2d8   :  { %v694_v14 = vsub.f32 1.0, %v693_v59  ;;  %v680_v61 = vsel %vm679_vm10, %v1246_v9, %v676_v53  ;;  %v1336_v9 = vld [vmem:[#allocation8 + $0x20] sm:$0xff] }
 0x2d9   :  { %v685_v27 = vsel %vm682_vm11, %v684_v51, %v680_v61 }
 0x2da   :  { %v695_v60 = vmul.f32 %v1248_v0, %v694_v14  ;;  %v708_v49 = vmul.f32 %v707_v13, %v685_v27 }
 0x2dc   :  { %v709_v30 = vadd.f32 %v708_v49, %v228_v48  ;;  %v696_v35 = vadd.f32 %v1248_v0, %v695_v60 }
 0x2de   :  { %1249 = vtanh.f32 %v709_v30  ;;  %v700_v36 = vsel %vm699_vm14, %v1248_v0, %v696_v35  ;;  %v229_v0 = vadd.f32 %v2216_v23, %v198_v28 }
 0x2df   :  { %v705_v41 = vsel %vm702_vm15, %v704_v38, %v700_v36 }
 0x2e0   :  { %v711_v44 = vsub.f32 1.0, %v705_v41  ;;  %v713_v52 = vmul.f32 %v705_v41, %v1904_v56  ;;  %v2018_v56 = vld [vmem:[#allocation8 + $0x148] sm:$0xff] }
 0x2e4   :  { %v1250_v47 = vpop.eup %1249 }
 0x2e5   :  { %v712_v50 = vmul.f32 %v1250_v47, %v711_v44 }
 0x2e7   :  { %v2003_v3 = vadd.f32 %v713_v52, %v712_v50  ;;  %v200_v52 = vmul.f32 %v1767_v63, %v157_v25 }
 0x2e9   :  { %735 = vmatmul.f32.vlgmr.msrb.gmra.mxu0 %v2003_v3  ;;  %755 = vmatmul.f32.vlgmr.msrb.gmra.mxu1 %v2003_v3 }
 0x2ea   :  { %775 = vmatmul.f32.vlgmr.msrb.gmra.mxu2 %v2003_v3  ;;  %983 = vmatpush.msrb.mxu0 %v2008_v4 }
 0x2eb   :  { %1055 = vmatpush.msrb.mxu1 %v1910_v46  ;;  %1075 = vmatpush.msrb.mxu2 %v1913_v2  ;;  %v2028_v46 = vld [vmem:[#allocation8 + $0x118] sm:$0xff]  ;;  %v2033_v2 = vld [vmem:[#allocation8 + $0x100] sm:$0xff] }
 0x2ec   :  { %984 = vmatpush.msrb.mxu0 %v2013_v5 }
 0x2ed   :  { %1056 = vmatpush.msrb.mxu1 %v1917_v16  ;;  %1076 = vmatpush.msrb.mxu2 %v1920_v40  ;;  %v2038_v16 = vld [vmem:[#allocation8 + $0xe8] sm:$0xff]  ;;  %v2043_v40 = vld [vmem:[#allocation8 + $0xd0] sm:$0xff] }
 0x2ee   :  { %985 = vmatpush.msrb.mxu0 %v2018_v56 }
 0x2ef   :  { %1057 = vmatpush.msrb.mxu1 %v1924_v17  ;;  %1077 = vmatpush.msrb.mxu2 %v1927_v62  ;;  %v2048_v17 = vld [vmem:[#allocation8 + $0xb8] sm:$0xff]  ;;  %v2053_v62 = vld [vmem:[#allocation8 + $0xa0] sm:$0xff] }
 0x2f0   :  { %986 = vmatpush.msrb.mxu0 %v2023_v6 }
 0x2f1   :  { %1058 = vmatpush.msrb.mxu1 %v1931_v18  ;;  %1078 = vmatpush.msrb.mxu2 %v1934_v58  ;;  %v1321_v18 = vld [vmem:[#allocation8 + $0x98] sm:$0xff]  ;;  %v2057_v58 = vld [vmem:[#allocation8 + $0x88] sm:$0xff] }
 0x2f2   :  { %987 = vmatpush.msrb.mxu0 %v2028_v46 }
 0x2f3   :  { %1059 = vmatpush.msrb.mxu1 %v1938_v21  ;;  %1079 = vmatpush.msrb.mxu2 %v1941_v54  ;;  %v1323_v21 = vld [vmem:[#allocation8 + $0x78] sm:$0xff]  ;;  %v1324_v54 = vld [vmem:[#allocation8 + $0x80] sm:$0xff] }
 0x2f4   :  { %988 = vmatpush.msrb.mxu0 %v2033_v2 }
 0x2f5   :  { %1060 = vmatpush.msrb.mxu1 %v1945_v24  ;;  %1080 = vmatpush.msrb.mxu2 %v1948_v55  ;;  %v2060_v24 = vld [vmem:[#allocation8 + $0x70] sm:$0xff]  ;;  %v1326_v55 = vld [vmem:[#allocation8 + $0x60] sm:$0xff] }
 0x2f6   :  { %989 = vmatpush.msrb.mxu0 %v2038_v16 }
 0x2f7   :  { %1061 = vmatpush.msrb.mxu1 %v1952_v29  ;;  %1081 = vmatpush.msrb.mxu2 %v1955_v42  ;;  %v1327_v29 = vld [vmem:[#allocation8 + $0x68] sm:$0xff]  ;;  %v2063_v42 = vld [vmem:[#allocation8 + $0x58] sm:$0xff] }
 0x2f8   :  { %990 = vmatpush.msrb.mxu0 %v2043_v40 }
 0x2f9   :  { %1062 = vmatpush.msrb.mxu1 %v1959_v31  ;;  %1082 = vmatpush.msrb.mxu2 %v1962_v19  ;;  %v1329_v31 = vld [vmem:[#allocation8 + $0x48] sm:$0xff]  ;;  %v1330_v19 = vld [vmem:[#allocation8 + $0x50] sm:$0xff] }
 0x2fa   :  { %991 = vmatpush.msrb.mxu0 %v2048_v17 }
 0x2fb   :  { %1063 = vmatpush.msrb.mxu1 %v1966_v34  ;;  %1083 = vmatpush.msrb.mxu2 %v1969_v22  ;;  %v2066_v34 = vld [vmem:[#allocation8 + $0x40] sm:$0xff]  ;;  %v1332_v22 = vld [vmem:[#allocation8 + $0x30] sm:$0xff] }
 0x2fc   :  { %992 = vmatpush.msrb.mxu0 %v2053_v62 }
 0x2fd   :  { %1064 = vmatpush.msrb.mxu1 %v1973_v37  ;;  %1084 = vmatpush.msrb.mxu2 %v1321_v18  ;;  %v1333_v37 = vld [vmem:[#allocation8 + $0x38] sm:$0xff] }
 0x2fe   :  { %993 = vmatpush.msrb.mxu0 %v2057_v58 }
 0x2ff   :  { %1065 = vmatpush.msrb.mxu1 %v1323_v21  ;;  %1085 = vmatpush.msrb.mxu2 %v1324_v54 }
 0x300   :  { %994 = vmatpush.msrb.mxu0 %v2060_v24 }
 0x301   :  { %1066 = vmatpush.msrb.mxu1 %v1326_v55  ;;  %1086 = vmatpush.msrb.mxu2 %v1327_v29 }
 0x302   :  { %995 = vmatpush.msrb.mxu0 %v2063_v42 }
 0x303   :  { %1067 = vmatpush.msrb.mxu1 %v1329_v31  ;;  %1087 = vmatpush.msrb.mxu2 %v1330_v19  ;;  %v231_v19 = vadd.f32 %v1774_v57, %v200_v52 }
 0x304   :  { %996 = vmatpush.msrb.mxu0 %v2066_v34 }
 0x305   :  { %1068 = vmatpush.msrb.mxu1 %v1332_v22  ;;  %1088 = vmatpush.msrb.mxu2 %v1333_v37 }
 0x306   :  { %997 = vmatpush.msrb.mxu0 %v2069_v7 }
 0x307   :  { %1069 = vmatpush.msrb.mxu1 %v1335_v8  ;;  %1089 = vmatpush.msrb.mxu2 %v1336_v9 }
 0x308   :  { %998 = vmatpush.msrb.mxu0 %v2072_v10 }
 0x309   :  { %1070 = vmatpush.msrb.mxu1 %v1338_v11  ;;  %1090 = vmatpush.msrb.mxu2 %v1339_v12 }
 0x366   :  { %v736_v45 = vpop.f32.mrf.mxu0  ;;  %v756_v59 = vpop.f32.mrf.mxu1 }
 0x367   :  { %v779_v53 = vadd.f32 %v736_v45, %v229_v0  ;;  %v799_v51 = vadd.f32 %v756_v59, %v230_v43 }
 0x369   :  { %v1191_v14 = vmul.f32 -1.442695, %v779_v53  ;;  %v1192_v61 = vmul.f32 -1.442695, %v799_v51 }
 0x36b   :  { %1251 = vpow2.f32 %v1191_v14 }
 0x36c   :  { %1253 = vpow2.f32 %v1192_v61 }
 0x36d   :  { %v776_v50 = vpop.f32.mrf.mxu2 }
 0x36e   :  { %v819_v55 = vadd.f32 %v1772_v1, %v776_v50 }
 0x371   :  { %v1252_v13 = vpop.eup %1251 }
 0x372   :  { %v1254_v48 = vpop.eup %1253  ;;  %v783_v27 = vadd.f32 1.0, %v1252_v13 }
 0x373   :  { %v803_v60 = vadd.f32 1.0, %v1254_v48 }
 0x374   :  { %1255 = vrcp.f32 %v783_v27  ;;  %v795_v38 = vand.u32 2147483648, %v783_v27  ;;  %v793_v44 = vand.u32 2147483647, %v783_v27  ;;  %vm789_vm1 = vweird.f32 %v783_v27 }
 0x375   :  { %1257 = vrcp.f32 %v803_v60  ;;  %v815_v37 = vand.u32 2147483648, %v803_v60  ;;  %vm809_vm5 = vweird.f32 %v803_v60  ;;  %v813_v8 = vand.u32 2147483647, %v803_v60 }
 0x376   :  { %v796_v21 = vor.u32 1.1754944e-38, %v795_v38  ;;  %vm794_vm3 = vcmp.eq.f32.partialorder %v793_v44, 8.507059e+37 }
 0x377   :  { %v816_v12 = vor.u32 1.1754944e-38, %v815_v37  ;;  %vm814_vm7 = vcmp.eq.f32.partialorder %v813_v8, 8.507059e+37  ;;  %v171_v37 = vpop.permute.xlu0 %170 }
 0x378   :  { %v204_v8 = vmul.f32 %v2214_v15, %v171_v37 }
 0x37a   :  { %v1256_v49 = vpop.eup %1255 }
 0x37b   :  { %v1258_v32 = vpop.eup %1257  ;;  %v785_v33 = vmul.f32 %v1256_v49, %v783_v27  ;;  %vm790_vm0 = vweird.f32 %v1256_v49 }
 0x37c   :  { %v805_v30 = vmul.f32 %v1258_v32, %v803_v60  ;;  %vm791_vm2 = vmor %vm789_vm1, %vm790_vm0  ;;  %vm810_vm4 = vweird.f32 %v1258_v32 }
 0x37d   :  { %v786_v35 = vsub.f32 1.0, %v785_v33  ;;  %vm811_vm6 = vmor %vm809_vm5, %vm810_vm4  ;;  %v2112_v33 = vld [vmem:[%s2141_s4] ss:$0 sm:$0xff] }
 0x37e   :  { %v806_v36 = vsub.f32 1.0, %v805_v30 }
 0x37f   :  { %v787_v41 = vmul.f32 %v1256_v49, %v786_v35 }
 0x380   :  { %v807_v47 = vmul.f32 %v1258_v32, %v806_v36 }
 0x381   :  { %v788_v18 = vadd.f32 %v1256_v49, %v787_v41 }
 0x382   :  { %v808_v31 = vadd.f32 %v1258_v32, %v807_v47 }
 0x383   :  { %v792_v54 = vsel %vm791_vm2, %v1256_v49, %v788_v18 }
 0x384   :  { %v797_v29 = vsel %vm794_vm3, %v796_v21, %v792_v54  ;;  %v812_v11 = vsel %vm811_vm6, %v1258_v32, %v808_v31 }
 0x385   :  { %v820_v22 = vmul.f32 %v819_v55, %v797_v29  ;;  %v817_v25 = vsel %vm814_vm7, %v816_v12, %v812_v11  ;;  %v235_v11 = vadd.f32 %v2216_v23, %v204_v8 }
 0x386   :  { %v823_v28 = vsub.f32 1.0, %v817_v25  ;;  %v825_v1 = vmul.f32 %v817_v25, %v2003_v3  ;;  %v164_v3 = vpop.permute.xlu2 %163 }
 0x387   :  { %v821_v9 = vadd.f32 %v820_v22, %v231_v19  ;;  %v203_v60 = vmul.f32 %v1767_v63, %v164_v3 }
 0x389   :  { %1259 = vtanh.f32 %v821_v9  ;;  %v234_v41 = vadd.f32 %v1774_v57, %v203_v60  ;;  %v205_v9 = vmul.f32 %v2215_v20, %v171_v37 }
 0x38b   :  { %v236_v12 = vadd.f32 %v2217_v26, %v205_v9 }
 0x38f   :  { %v1260_v39 = vpop.eup %1259 }
 0x390   :  { %v824_v0 = vmul.f32 %v1260_v39, %v823_v28 }
 0x392   :  { %v2083_v43 = vadd.f32 %v825_v1, %v824_v0 }
 0x394   :  { %847 = vmatmul.f32.vlgmr.msrb.gmra.mxu3 %v2083_v43  ;;  %867 = vmatmul.f32.vlgmr.msra.gmra.mxu0 %v2083_v43 }
 0x395   :  { %887 = vmatmul.f32.vlgmr.msra.gmra.mxu1 %v2083_v43  ;;  %1095 = vmatpush.msrb.mxu3 %v2008_v4  ;;  %v202_v4 = vmul.f32 %v2215_v20, %v164_v3 }
 0x397   :  { %1096 = vmatpush.msrb.mxu3 %v2013_v5  ;;  %v233_v5 = vadd.f32 %v2217_v26, %v202_v4 }
 0x399   :  { %1097 = vmatpush.msrb.mxu3 %v2018_v56 }
 0x39b   :  { %1098 = vmatpush.msrb.mxu3 %v2023_v6  ;;  %v201_v6 = vmul.f32 %v2214_v15, %v164_v3 }
 0x39d   :  { %1099 = vmatpush.msrb.mxu3 %v2028_v46 }
 0x39f   :  { %1100 = vmatpush.msrb.mxu3 %v2033_v2 }
 0x3a1   :  { %1101 = vmatpush.msrb.mxu3 %v2038_v16  ;;  %v232_v16 = vadd.f32 %v2216_v23, %v201_v6 }
 0x3a3   :  { %1102 = vmatpush.msrb.mxu3 %v2043_v40 }
 0x3a5   :  { %1103 = vmatpush.msrb.mxu3 %v2048_v17 }
 0x3a7   :  { %1104 = vmatpush.msrb.mxu3 %v2053_v62 }
 0x3a9   :  { %1105 = vmatpush.msrb.mxu3 %v2057_v58 }
 0x3ab   :  { %1106 = vmatpush.msrb.mxu3 %v2060_v24 }
 0x3ad   :  { %1107 = vmatpush.msrb.mxu3 %v2063_v42 }
 0x3af   :  { %1108 = vmatpush.msrb.mxu3 %v2066_v34 }
 0x3b1   :  { %1109 = vmatpush.msrb.mxu3 %v2069_v7 }
 0x3b3   :  { %1110 = vmatpush.msrb.mxu3 %v2072_v10 }
 0x411   :  { %v868_v56 = vpop.f32.mrf.mxu0 }
 0x412   :  { %v911_v46 = vadd.f32 %v868_v56, %v233_v5  ;;  %v888_v27 = vpop.f32.mrf.mxu1 }
 0x413   :  { %v931_v30 = vadd.f32 %v2112_v33, %v888_v27 }
 0x414   :  { %v1194_v2 = vmul.f32 -1.442695, %v911_v46 }
 0x416   :  { %1261 = vpow2.f32 %v1194_v2 }
 0x417   :  { %v848_v40 = vpop.f32.mrf.mxu3 }
 0x418   :  { %v891_v17 = vadd.f32 %v848_v40, %v232_v16 }
 0x41a   :  { %v1193_v62 = vmul.f32 -1.442695, %v891_v17 }
 0x41c   :  { %v1262_v58 = vpop.eup %1261  ;;  %1263 = vpow2.f32 %v1193_v62 }
 0x41d   :  { %v915_v24 = vadd.f32 1.0, %v1262_v58 }
 0x41f   :  { %1265 = vrcp.f32 %v915_v24  ;;  %v927_v44 = vand.u32 2147483648, %v915_v24  ;;  %vm921_vm13 = vweird.f32 %v915_v24  ;;  %v925_v50 = vand.u32 2147483647, %v915_v24 }
 0x421   :  { %v928_v21 = vor.u32 1.1754944e-38, %v927_v44  ;;  %vm926_vm15 = vcmp.eq.f32.partialorder %v925_v50, 8.507059e+37 }
 0x422   :  { %v1264_v42 = vpop.eup %1263 }
 0x423   :  { %v895_v34 = vadd.f32 1.0, %v1264_v42 }
 0x425   :  { %1267 = vrcp.f32 %v895_v34  ;;  %v1266_v7 = vpop.eup %1265  ;;  %v907_v14 = vand.u32 2147483648, %v895_v34  ;;  %v905_v13 = vand.u32 2147483647, %v895_v34  ;;  %vm901_vm9 = vweird.f32 %v895_v34 }
 0x426   :  { %v917_v10 = vmul.f32 %v1266_v7, %v915_v24  ;;  %vm922_vm12 = vweird.f32 %v1266_v7 }
 0x427   :  { %v908_v32 = vor.u32 1.1754944e-38, %v907_v14  ;;  %vm906_vm11 = vcmp.eq.f32.partialorder %v905_v13, 8.507059e+37  ;;  %vm923_vm14 = vmor %vm921_vm13, %vm922_vm12 }
 0x428   :  { %v918_v53 = vsub.f32 1.0, %v917_v10 }
 0x42a   :  { %v919_v48 = vmul.f32 %v1266_v7, %v918_v53 }
 0x42b   :  { %v1268_v45 = vpop.eup %1267 }
 0x42c   :  { %v897_v59 = vmul.f32 %v1268_v45, %v895_v34  ;;  %vm902_vm8 = vweird.f32 %v1268_v45  ;;  %v920_v38 = vadd.f32 %v1266_v7, %v919_v48 }
 0x42d   :  { %vm903_vm10 = vmor %vm901_vm9, %vm902_vm8 }
 0x42e   :  { %v898_v51 = vsub.f32 1.0, %v897_v59  ;;  %v924_v18 = vsel %vm923_vm14, %v1266_v7, %v920_v38  ;;  %v206_v7 = vmul.f32 %v1767_v63, %v171_v37 }
 0x42f   :  { %v929_v54 = vsel %vm926_vm15, %v928_v21, %v924_v18 }
 0x430   :  { %v899_v61 = vmul.f32 %v1268_v45, %v898_v51  ;;  %v935_v55 = vsub.f32 1.0, %v929_v54  ;;  %v937_v19 = vmul.f32 %v929_v54, %v2083_v43 }
 0x432   :  { %v900_v49 = vadd.f32 %v1268_v45, %v899_v61  ;;  %v237_v61 = vadd.f32 %v1774_v57, %v206_v7 }
 0x434   :  { %v904_v35 = vsel %vm903_vm10, %v1268_v45, %v900_v49 }
 0x435   :  { %v909_v36 = vsel %vm906_vm11, %v908_v32, %v904_v35 }
 0x436   :  { %v932_v47 = vmul.f32 %v931_v30, %v909_v36 }
 0x438   :  { %v933_v52 = vadd.f32 %v932_v47, %v234_v41  ;;  %v178_v47 = vpop.permute.xlu1 %177 }
 0x439   :  { %v207_v50 = vmul.f32 %v2214_v15, %v178_v47  ;;  %v208_v21 = vmul.f32 %v2215_v20, %v178_v47 }
 0x43a   :  { %1269 = vtanh.f32 %v933_v52 }
 0x43b   :  { %v238_v52 = vadd.f32 %v2216_v23, %v207_v50 }
 0x440   :  { %v1270_v29 = vpop.eup %1269 }
 0x441   :  { %v936_v31 = vmul.f32 %v1270_v29, %v935_v55  ;;  %v239_v29 = vadd.f32 %v2217_v26, %v208_v21  ;;  %v209_v26 = vmul.f32 %v1767_v63, %v178_v47 }
 0x443   :  { %v938_v22 = vadd.f32 %v937_v19, %v936_v31 }
 0x445   :  { %959 = vmatmul.f32.vlgmr.msra.gmra.mxu2 %v938_v22  ;;  %979 = vmatmul.f32.vlgmr.msra.gmra.mxu3 %v938_v22 }
 0x446   :  { %999 = vmatmul.f32.vlgmr.msrb.gmra.mxu0 %v938_v22 }
 0x4c3   :  { %v1000_v42 = vpop.f32.mrf.mxu0 }
 0x4c4   :  { %v1043_v59 = vadd.f32 %v2112_v33, %v1000_v42 }
 0x4c8   :  { %v960_v25 = vpop.f32.mrf.mxu2  ;;  %v980_v28 = vpop.f32.mrf.mxu3 }
 0x4c9   :  { %v1003_v39 = vadd.f32 %v960_v25, %v235_v11  ;;  %v1023_v0 = vadd.f32 %v980_v28, %v236_v12 }
 0x4cb   :  { %v1195_v1 = vmul.f32 -1.442695, %v1003_v39  ;;  %v1196_v3 = vmul.f32 -1.442695, %v1023_v0 }
 0x4cd   :  { %1271 = vpow2.f32 %v1195_v1 }
 0x4ce   :  { %1273 = vpow2.f32 %v1196_v3 }
 0x4d3   :  { %v1272_v43 = vpop.eup %1271 }
 0x4d4   :  { %v1274_v4 = vpop.eup %1273  ;;  %v1007_v5 = vadd.f32 1.0, %v1272_v43 }
 0x4d5   :  { %v1027_v56 = vadd.f32 1.0, %v1274_v4 }
 0x4d6   :  { %1275 = vrcp.f32 %v1007_v5  ;;  %v1019_v17 = vand.u32 2147483648, %v1007_v5  ;;  %v1017_v24 = vand.u32 2147483647, %v1007_v5  ;;  %vm1013_vm1 = vweird.f32 %v1007_v5 }
 0x4d7   :  { %1277 = vrcp.f32 %v1027_v56  ;;  %v1039_v13 = vand.u32 2147483648, %v1027_v56  ;;  %vm1033_vm5 = vweird.f32 %v1027_v56  ;;  %v1037_v27 = vand.u32 2147483647, %v1027_v56 }
 0x4d8   :  { %v1020_v45 = vor.u32 1.1754944e-38, %v1019_v17  ;;  %vm1018_vm3 = vcmp.eq.f32.partialorder %v1017_v24, 8.507059e+37 }
 0x4d9   :  { %v1040_v32 = vor.u32 1.1754944e-38, %v1039_v13  ;;  %vm1038_vm7 = vcmp.eq.f32.partialorder %v1037_v27, 8.507059e+37 }
 0x4dc   :  { %v1276_v6 = vpop.eup %1275 }
 0x4dd   :  { %v1278_v46 = vpop.eup %1277  ;;  %v1009_v2 = vmul.f32 %v1276_v6, %v1007_v5  ;;  %vm1014_vm0 = vweird.f32 %v1276_v6 }
 0x4de   :  { %v1029_v16 = vmul.f32 %v1278_v46, %v1027_v56  ;;  %vm1015_vm2 = vmor %vm1013_vm1, %vm1014_vm0  ;;  %vm1034_vm4 = vweird.f32 %v1278_v46  ;;  %vm1175_vm0 = vcmask 7168  }
 0x4df   :  { %v1010_v40 = vsub.f32 1.0, %v1009_v2  ;;  %vm1035_vm6 = vmor %vm1033_vm5, %vm1034_vm4 }
 0x4e0   :  { %v1030_v62 = vsub.f32 1.0, %v1029_v16 }
 0x4e1   :  { %v1011_v58 = vmul.f32 %v1276_v6, %v1010_v40 }
 0x4e2   :  { %v1031_v34 = vmul.f32 %v1278_v46, %v1030_v62 }
 0x4e3   :  { %v1012_v10 = vadd.f32 %v1276_v6, %v1011_v58 }
 0x4e4   :  { %v1032_v14 = vadd.f32 %v1278_v46, %v1031_v34 }
 0x4e5   :  { %v1016_v53 = vsel %vm1015_vm2, %v1276_v6, %v1012_v10  ;;  %v240_v6 = vadd.f32 %v1774_v57, %v209_v26  ;;  %v1209_v57 = vld [vmem:[%s2142_s5] ss:$0 sm:$0xff] }
 0x4e6   :  { %v1021_v51 = vsel %vm1018_vm3, %v1020_v45, %v1016_v53  ;;  %v1036_v49 = vsel %vm1035_vm6, %v1278_v46, %v1032_v14  ;;  %v1210_v53 = vld [vmem:[#allocation3] ss:$0 sm:$0xff] }
 0x4e7   :  { %v1044_v48 = vmul.f32 %v1043_v59, %v1021_v51  ;;  %v1041_v30 = vsel %vm1038_vm7, %v1040_v32, %v1036_v49 }
 0x4e8   :  { %v1047_v35 = vsub.f32 1.0, %v1041_v30  ;;  %v1049_v41 = vmul.f32 %v1041_v30, %v938_v22 }
 0x4e9   :  { %v1045_v60 = vadd.f32 %v1044_v48, %v237_v61 }
 0x4eb   :  { %1279 = vtanh.f32 %v1045_v60 }
 0x4f1   :  { %v1280_v36 = vpop.eup %1279 }
 0x4f2   :  { %v1048_v38 = vmul.f32 %v1280_v36, %v1047_v35 }
 0x4f4   :  { %v1050_v44 = vadd.f32 %v1049_v41, %v1048_v38 }
 0x4f6   :  { %1071 = vmatmul.f32.vlgmr.msrb.gmra.mxu1 %v1050_v44  ;;  %1091 = vmatmul.f32.vlgmr.msrb.gmra.mxu2 %v1050_v44 }
 0x4f7   :  { %1111 = vmatmul.f32.vlgmr.msrb.gmra.mxu3 %v1050_v44 }
 0x573   :  { %v1072_v18 = vpop.f32.mrf.mxu1 }
 0x574   :  { %v1115_v54 = vadd.f32 %v1072_v18, %v238_v52 }
 0x576   :  { %v1197_v55 = vmul.f32 -1.442695, %v1115_v54 }
 0x578   :  { %1281 = vpow2.f32 %v1197_v55 }
 0x579   :  { %v1092_v31 = vpop.f32.mrf.mxu2 }
 0x57a   :  { %v1135_v19 = vadd.f32 %v1092_v31, %v239_v29  ;;  %v1112_v0 = vpop.f32.mrf.mxu3 }
 0x57b   :  { %v1155_v56 = vadd.f32 %v2112_v33, %v1112_v0 }
 0x57c   :  { %v1198_v22 = vmul.f32 -1.442695, %v1135_v19 }
 0x57e   :  { %v1282_v37 = vpop.eup %1281  ;;  %1283 = vpow2.f32 %v1198_v22 }
 0x57f   :  { %v1119_v8 = vadd.f32 1.0, %v1282_v37 }
 0x581   :  { %1285 = vrcp.f32 %v1119_v8  ;;  %v1131_v25 = vand.u32 2147483648, %v1119_v8  ;;  %v1129_v28 = vand.u32 2147483647, %v1119_v8  ;;  %vm1125_vm9 = vweird.f32 %v1119_v8 }
 0x583   :  { %v1132_v43 = vor.u32 1.1754944e-38, %v1131_v25  ;;  %vm1130_vm11 = vcmp.eq.f32.partialorder %v1129_v28, 8.507059e+37 }
 0x584   :  { %v1284_v9 = vpop.eup %1283 }
 0x585   :  { %v1139_v11 = vadd.f32 1.0, %v1284_v9 }
 0x587   :  { %v1286_v15 = vpop.eup %1285  ;;  %1287 = vrcp.f32 %v1139_v11  ;;  %v1151_v40 = vand.u32 2147483648, %v1139_v11  ;;  %v1149_v17 = vand.u32 2147483647, %v1139_v11  ;;  %vm1145_vm13 = vweird.f32 %v1139_v11 }
 0x588   :  { %v1121_v23 = vmul.f32 %v1286_v15, %v1119_v8  ;;  %vm1126_vm8 = vweird.f32 %v1286_v15 }
 0x589   :  { %vm1127_vm10 = vmor %vm1125_vm9, %vm1126_vm8  ;;  %v1152_v24 = vor.u32 1.1754944e-38, %v1151_v40  ;;  %vm1150_vm15 = vcmp.eq.f32.partialorder %v1149_v17, 8.507059e+37 }
 0x58a   :  { %v1122_v12 = vsub.f32 1.0, %v1121_v23 }
 0x58c   :  { %v1123_v20 = vmul.f32 %v1286_v15, %v1122_v12 }
 0x58d   :  { %v1288_v39 = vpop.eup %1287 }
 0x58e   :  { %v1141_v1 = vmul.f32 %v1288_v39, %v1139_v11  ;;  %v1124_v3 = vadd.f32 %v1286_v15, %v1123_v20  ;;  %vm1146_vm12 = vweird.f32 %v1288_v39 }
 0x58f   :  { %vm1147_vm14 = vmor %vm1145_vm13, %vm1146_vm12 }
 0x590   :  { %v1142_v4 = vsub.f32 1.0, %v1141_v1  ;;  %v1128_v5 = vsel %vm1127_vm10, %v1286_v15, %v1124_v3 }
 0x591   :  { %v1133_v46 = vsel %vm1130_vm11, %v1132_v43, %v1128_v5 }
 0x592   :  { %v1156_v2 = vmul.f32 %v1155_v56, %v1133_v46  ;;  %v1143_v16 = vmul.f32 %v1288_v39, %v1142_v4 }
 0x594   :  { %v1157_v63 = vadd.f32 %v1156_v2, %v240_v6  ;;  %v1144_v62 = vadd.f32 %v1288_v39, %v1143_v16 }
 0x596   :  { %1289 = vtanh.f32 %v1157_v63  ;;  %v1148_v58 = vsel %vm1147_vm14, %v1288_v39, %v1144_v62 }
 0x597   :  { %v1153_v42 = vsel %vm1150_vm15, %v1152_v24, %v1148_v58 }
 0x598   :  { %v1159_v34 = vsub.f32 1.0, %v1153_v42  ;;  %v1161_v10 = vmul.f32 %v1153_v42, %v1050_v44 }
 0x59c   :  { %v1290_v7 = vpop.eup %1289 }
 0x59d   :  { %v1160_v33 = vmul.f32 %v1290_v7, %v1159_v34 }
 0x59f   :  { %v1162_v45 = vadd.f32 %v1161_v10, %v1160_v33 }
 0x5a1   :  { %v1167_v59 = vmul.f32 %v1209_v57, %v1162_v45 }
 0x5a3   :  { %1168 = vadd.xlane.f32.xlu2 %v1167_v59 }
 0x616   :  { %v1169_v51 = vpop.xlane.xlu2 %1168 }
 0x617   :  { %v1174_v14 = vadd.f32 %v1210_v53, %v1169_v51 }
 0x619   :  { %1176 = vst.msk [vmem:[%s2144_s7] sm:$0xff] %vm1175_vm0, %v1174_v14 }
 0x61a   :  { %1181 = vsyncpa [#allocation5], 1 }
 0x61b   :  { %1182 = vsyncpa [#allocation7], 1 }

</bundles_post_ra>
